<compile_context>
chip_gen: v5e
topology: v5e:2x2
jax: 0.10.0
libtpu: 0.0.40
codegen_flags: <defaults>
</compile_context>

<pallas_src>
import math
import jax
import jax.numpy as jnp
from jax.experimental import pallas as pl
from jax.experimental.pallas import tpu as pltpu

# ----------------------------- model config (small) -----------------------------
B = 2      # batch
S = 8      # sequence length
H = 32     # hidden size
L = 2      # encoder layers
NH = 2     # attention heads
DH = H // NH
F = 64     # FFN intermediate size
NI = 4     # num_intent_classes
NS = 9     # num_slot_classes
A = 16     # attention_embedding_size (SlotClassifier projection dim)
V = 50     # vocab size
PAD_ID = 1
MAXPOS = S + 4
LN_EPS = 1e-5
INIT = 0.2

R = B * S          # flattened token rows
OUT_W = 128        # lane-dense packed output width
SLOT_LOGIT_OFF = 0
SLOT_PRED_OFF = 16
INT_LOGIT_OFF = 32
INT_PRED_OFF = 48

SLAB_W = 128       # lane width of the packed parameter slab


# --------------------- packed-parameter slab row layout -------------------------
def _build_rows():
    rows, cur = {}, 0

    def alloc(name, r):
        nonlocal cur
        rows[name] = cur
        cur += ((r + 7) // 8) * 8          # 8-row (sublane-tile) aligned slots

    alloc("eg", 1); alloc("eb", 1)
    for l in range(L):
        alloc(f"wq{l}", H); alloc(f"wk{l}", H); alloc(f"wv{l}", H); alloc(f"wo{l}", H)
        alloc(f"w1{l}", H); alloc(f"w2{l}", F)
        alloc(f"bq{l}", 1); alloc(f"bk{l}", 1); alloc(f"bv{l}", 1); alloc(f"bo{l}", 1)
        alloc(f"ln1g{l}", 1); alloc(f"ln1b{l}", 1)
        alloc(f"b1{l}", 1); alloc(f"b2{l}", 1)
        alloc(f"ln2g{l}", 1); alloc(f"ln2b{l}", 1)
    alloc("wp", H); alloc("wi", H); alloc("wsl", H)
    alloc("bp", 1); alloc("bi", 1); alloc("bl", 1)
    return rows, ((cur + 7) // 8) * 8


ROW, SLAB_ROWS = _build_rows()


def _ln(x, g, b, eps=LN_EPS):
    mu = jnp.mean(x, axis=-1, keepdims=True)
    var = jnp.mean((x - mu) ** 2, axis=-1, keepdims=True)
    return (x - mu) * jax.lax.rsqrt(var + eps) * g + b


# --------------------------------- the kernel ----------------------------------
def phobert_bio_kernel(x_ref, kb_ref, p_ref, out_ref):
    # p_ref: (SLAB_ROWS, 128) packed parameter slab; static, aligned slices only.
    def mat(name, kd, nd):
        r = ROW[name]
        return p_ref[r:r + kd, 0:nd]

    def vec(name, nd):
        r = ROW[name]
        return p_ref[r:r + 1, 0:nd]

    bias_hb = kb_ref[...]                                   # (NH*B, 1, S) additive key bias
    h = _ln(x_ref[...], vec("eg", H), vec("eb", H))          # (R, H)
    scale = 1.0 / math.sqrt(DH)

    def to_heads(t):
        # (R, H) -> (NH*B, S, DH): per-head lane slice, then leading-axis stack
        # (leading-dim concat + tile-aligned reshapes only; no transposes).
        parts = [t[:, hd * DH:(hd + 1) * DH].reshape(1, B, S, DH) for hd in range(NH)]
        return jnp.concatenate(parts, axis=0).reshape(NH * B, S, DH)

    for l in range(L):
        # three lane-origin-0 projections (no 96-lane result sliced at 32-lane offsets)
        q = jnp.dot(h, mat(f"wq{l}", H, H), preferred_element_type=jnp.float32) + vec(f"bq{l}", H)
        k = jnp.dot(h, mat(f"wk{l}", H, H), preferred_element_type=jnp.float32) + vec(f"bk{l}", H)
        v = jnp.dot(h, mat(f"wv{l}", H, H), preferred_element_type=jnp.float32) + vec(f"bv{l}", H)

        qh, kh, vh = to_heads(q), to_heads(k), to_heads(v)

        # one batched einsum pair for all heads & sequences
        s = jnp.einsum("bqd,bkd->bqk", qh, kh,
                       preferred_element_type=jnp.float32) * scale + bias_hb
        pa = jax.nn.softmax(s, axis=-1)
        ctx = jnp.einsum("bqk,bkd->bqd", pa, vh,
                         preferred_element_type=jnp.float32)          # (NH*B, S, DH)
        ctx = ctx.reshape(NH, R, DH)                                   # (head, token-row, DH)

        # fold each head's context through its (DH,H) W_O row-block (exact algebra,
        # sublane-aligned weight slices; replaces the lane-axis head concat)
        wo_r = ROW[f"wo{l}"]
        attn = vec(f"bo{l}", H)
        for hd in range(NH):
            attn = attn + jnp.dot(ctx[hd],
                                  p_ref[wo_r + hd * DH: wo_r + (hd + 1) * DH, 0:H],
                                  preferred_element_type=jnp.float32)
        h = _ln(h + attn, vec(f"ln1g{l}", H), vec(f"ln1b{l}", H))

        ff = jnp.dot(h, mat(f"w1{l}", H, F), preferred_element_type=jnp.float32) + vec(f"b1{l}", F)
        # TODO(synk): HF/PyTorch PhoBERT uses exact erf GELU; tanh approximation used here
        # (the bundled reference uses the same, so parity is preserved in-script).
        ff = jax.nn.gelu(ff, approximate=True)
        ff = jnp.dot(ff, mat(f"w2{l}", F, H), preferred_element_type=jnp.float32) + vec(f"b2{l}", H)
        h = _ln(h + ff, vec(f"ln2g{l}", H), vec(f"ln2b{l}", H))

    # pooler + IntentClassifier, computed for every row (trivially cheap at this size);
    # the wrapper keeps only each sequence's CLS row.
    pooled = jnp.tanh(jnp.dot(h, mat("wp", H, H), preferred_element_type=jnp.float32)
                      + vec("bp", H))
    intent_logits = jnp.dot(pooled, mat("wi", H, NI),
                            preferred_element_type=jnp.float32) + vec("bi", NI)
    intent_pred = jax.nn.softmax(intent_logits, axis=-1)

    # SlotClassifier (use_attn=False): linear_slot @ linear pre-folded to one (H,NS) matmul
    slot_logits = jnp.dot(h, mat("wsl", H, NS),
                          preferred_element_type=jnp.float32) + vec("bl", NS)
    slot_pred = jax.nn.softmax(slot_logits, axis=-1)

    # single dense 128-lane writeback (no masked partial-lane stores)
    def z(w):
        return jnp.zeros((R, w), jnp.float32)

    out_ref[...] = jnp.concatenate(
        [slot_logits, z(SLOT_PRED_OFF - SLOT_LOGIT_OFF - NS),
         slot_pred, z(INT_LOGIT_OFF - SLOT_PRED_OFF - NS),
         intent_logits, z(INT_PRED_OFF - INT_LOGIT_OFF - NI),
         intent_pred, z(OUT_W - INT_PRED_OFF - NI)],
        axis=-1)


# ------------------------------ params & packing -------------------------------
def build_params(key):
    def dense(k, shape):
        return INIT * jax.random.normal(k, shape, jnp.float32)

    ks = list(jax.random.split(key, 32))
    p = {}
    # nn.Embedding(padding_idx=PAD_ID) rows are zero
    p["word_emb"] = dense(ks[0], (V, H)).at[PAD_ID].set(0.0)
    p["pos_emb"] = dense(ks[1], (MAXPOS, H)).at[PAD_ID].set(0.0)
    p["tok_emb"] = dense(ks[2], (1, H))
    p["eg"] = jnp.ones((1, H), jnp.float32)
    p["eb"] = jnp.zeros((1, H), jnp.float32)
    p["wq"] = dense(ks[3], (L, H, H)); p["bq"] = dense(ks[13], (L, 1, H))
    p["wk"] = dense(ks[4], (L, H, H)); p["bk"] = dense(ks[14], (L, 1, H))
    p["wv"] = dense(ks[5], (L, H, H)); p["bv"] = dense(ks[15], (L, 1, H))
    p["wo"] = dense(ks[6], (L, H, H)); p["bo"] = dense(ks[16], (L, 1, H))
    p["ln1g"] = jnp.ones((L, 1, H), jnp.float32); p["ln1b"] = jnp.zeros((L, 1, H), jnp.float32)
    p["w1"] = dense(ks[7], (L, H, F)); p["b1"] = dense(ks[17], (L, 1, F))
    p["w2"] = dense(ks[8], (L, F, H)); p["b2"] = dense(ks[18], (L, 1, H))
    p["ln2g"] = jnp.ones((L, 1, H), jnp.float32); p["ln2b"] = jnp.zeros((L, 1, H), jnp.float32)
    p["wp"] = dense(ks[9], (H, H)); p["bp"] = dense(ks[19], (1, H))
    p["wi"] = dense(ks[10], (H, NI)); p["bi"] = dense(ks[20], (1, NI))
    p["ws"] = dense(ks[11], (H, A))
    p["wl"] = dense(ks[12], (A, NS)); p["bl"] = dense(ks[21], (1, NS))
    return p


def pack_param_slab(p):
    """Fold + pack every weight/bias into one lane-dense (SLAB_ROWS, 128) f32 slab."""
    wsl = jnp.dot(p["ws"], p["wl"], precision=jax.lax.Precision.HIGHEST)   # folded slot head (H, NS)
    entries = [("eg", p["eg"]), ("eb", p["eb"])]
    for l in range(L):
        entries += [
            (f"wq{l}", p["wq"][l]), (f"wk{l}", p["wk"][l]), (f"wv{l}", p["wv"][l]),
            (f"wo{l}", p["wo"][l]), (f"w1{l}", p["w1"][l]), (f"w2{l}", p["w2"][l]),
            (f"bq{l}", p["bq"][l]), (f"bk{l}", p["bk"][l]), (f"bv{l}", p["bv"][l]),
            (f"bo{l}", p["bo"][l]), (f"ln1g{l}", p["ln1g"][l]), (f"ln1b{l}", p["ln1b"][l]),
            (f"b1{l}", p["b1"][l]), (f"b2{l}", p["b2"][l]),
            (f"ln2g{l}", p["ln2g"][l]), (f"ln2b{l}", p["ln2b"][l]),
        ]
    entries += [("wp", p["wp"]), ("wi", p["wi"]), ("wsl", wsl),
                ("bp", p["bp"]), ("bi", p["bi"]), ("bl", p["bl"])]

    slab = jnp.zeros((SLAB_ROWS, SLAB_W), jnp.float32)
    for name, a in entries:
        a = jnp.asarray(a, jnp.float32)
        if a.ndim == 1:
            a = a[None, :]
        slab = slab.at[ROW[name]:ROW[name] + a.shape[0], 0:a.shape[1]].set(a)
    return slab


def embed(p, input_ids, attention_mask):
    """Embedding gathers stay in plain JAX (data-dependent gather)."""
    mask_i = attention_mask.astype(jnp.int32)
    pos_ids = jnp.cumsum(mask_i, axis=1) * mask_i + PAD_ID            # RoBERTa position ids
    return (jnp.take(p["word_emb"], input_ids, axis=0)
            + jnp.take(p["pos_emb"], pos_ids, axis=0)
            + p["tok_emb"][0][None, None, :])                         # (B, S, H)


# ---------------------------------- wrapper ------------------------------------
def phobert_bio_forward(params, input_ids, attention_mask):
    """Returns the same dict keys as PhobertBIO.forward (labels=None, use_crf=False)."""
    mask_f = attention_mask.astype(jnp.float32)                       # (B, S)
    x_flat = embed(params, input_ids, attention_mask).reshape(R, H)   # (B*S, H)

    # additive key bias per (head, batch), hoisted out of the kernel's layer loop
    kbias = (mask_f - 1.0) * 1e9                                      # (B, S)
    kb_hb = jnp.broadcast_to(kbias[None, :, None, :], (NH, B, 1, S)).reshape(NH * B, 1, S)

    slab = pack_param_slab(params)                                    # (SLAB_ROWS, 128)

    def _full(shape):
        nd = len(shape)
        return pl.BlockSpec(shape, lambda i, nd=nd: (0,) * nd)

    out = pl.pallas_call(
        phobert_bio_kernel,
        out_shape=jax.ShapeDtypeStruct((R, OUT_W), jnp.float32),
        grid=(1,),                                    # single step: whole batch in VMEM
        in_specs=[_full(x_flat.shape), _full(kb_hb.shape), _full(slab.shape)],
        out_specs=_full((R, OUT_W)),
        compiler_params=pltpu.CompilerParams(dimension_semantics=("arbitrary",)),
    )(x_flat, kb_hb, slab)

    out = out.reshape(B, S, OUT_W)
    slot_logits = out[:, :, SLOT_LOGIT_OFF:SLOT_LOGIT_OFF + NS]
    slot_pred = out[:, :, SLOT_PRED_OFF:SLOT_PRED_OFF + NS]
    intent_logits = out[:, 0, INT_LOGIT_OFF:INT_LOGIT_OFF + NI]       # CLS rows only
    intent_pred = out[:, 0, INT_PRED_OFF:INT_PRED_OFF + NI]

    # TODO(synk): CRF branch (use_crf=True) and CrossEntropy losses are only active when
    # labels are provided; with labels=None the module returns 0 for both losses.
    return {
        "intent_loss": jnp.float32(0.0),
        "slot_loss": jnp.float32(0.0),
        "intent_pred": intent_pred,
        "slot_pred": slot_pred,
        "intent_logits": intent_logits,
        "slot_logits": slot_logits,
    }


# -------------------------- plain-JAX reference (unfused) ----------------------
def phobert_bio_reference(p, input_ids, attention_mask):
    PR = jax.lax.Precision.HIGHEST
    mask_f = attention_mask.astype(jnp.float32)
    x = embed(p, input_ids, attention_mask)                           # (B, S, H)
    bias = (mask_f - 1.0) * 1e9
    h = _ln(x, p["eg"], p["eb"])
    scale = 1.0 / math.sqrt(DH)
    for l in range(L):
        q = jnp.einsum("bsh,hd->bsd", h, p["wq"][l], precision=PR) + p["bq"][l]
        k = jnp.einsum("bsh,hd->bsd", h, p["wk"][l], precision=PR) + p["bk"][l]
        v = jnp.einsum("bsh,hd->bsd", h, p["wv"][l], precision=PR) + p["bv"][l]
        ctxs = []
        for hd in range(NH):
            lo, hi = hd * DH, (hd + 1) * DH
            s = jnp.einsum("bqd,bkd->bqk", q[..., lo:hi], k[..., lo:hi], precision=PR) * scale
            s = s + bias[:, None, :]
            pa = jax.nn.softmax(s, axis=-1)
            ctxs.append(jnp.einsum("bqk,bkd->bqd", pa, v[..., lo:hi], precision=PR))
        ctx = jnp.concatenate(ctxs, axis=-1)
        attn_out = jnp.einsum("bsh,hd->bsd", ctx, p["wo"][l], precision=PR) + p["bo"][l]
        h = _ln(h + attn_out, p["ln1g"][l], p["ln1b"][l])
        ff = jnp.einsum("bsh,hf->bsf", h, p["w1"][l], precision=PR) + p["b1"][l]
        ff = jax.nn.gelu(ff, approximate=True)
        ff = jnp.einsum("bsf,fh->bsh", ff, p["w2"][l], precision=PR) + p["b2"][l]
        h = _ln(h + ff, p["ln2g"][l], p["ln2b"][l])
    cls = h[:, 0, :]
    pooled = jnp.tanh(jnp.dot(cls, p["wp"], precision=PR) + p["bp"])
    intent_logits = jnp.dot(pooled, p["wi"], precision=PR) + p["bi"]
    xs = jnp.einsum("bsh,ha->bsa", h, p["ws"], precision=PR)
    slot_logits = jnp.einsum("bsa,an->bsn", xs, p["wl"], precision=PR) + p["bl"]
    return {
        "intent_logits": intent_logits,
        "slot_logits": slot_logits,
        "intent_pred": jax.nn.softmax(intent_logits, axis=-1),
        "slot_pred": jax.nn.softmax(slot_logits, axis=-1),
    }


if __name__ == "__main__":
    key = jax.random.PRNGKey(0)
    kp, kid = jax.random.split(key)
    params = build_params(kp)

    input_ids = jax.random.randint(kid, (B, S), 2, V, dtype=jnp.int32)
    attention_mask = jnp.ones((B, S), jnp.float32)
    attention_mask = attention_mask.at[1, S - 3:].set(0.0)            # pad tail of batch 1
    input_ids = jnp.where(attention_mask > 0, input_ids, PAD_ID)

    out = phobert_bio_forward(params, input_ids, attention_mask)
    out = jax.block_until_ready(out)

    ref = phobert_bio_reference(params, input_ids, attention_mask)

    assert out["intent_logits"].shape == (B, NI)
    assert out["intent_pred"].shape == (B, NI)
    assert out["slot_logits"].shape == (B, S, NS)
    assert out["slot_pred"].shape == (B, S, NS)
    assert bool(jnp.all(jnp.isfinite(out["slot_logits"])))
    assert bool(jnp.allclose(jnp.sum(out["intent_pred"], axis=-1), 1.0, atol=1e-5))
    assert bool(jnp.allclose(jnp.sum(out["slot_pred"], axis=-1), 1.0, atol=1e-5))
    for name in ("intent_logits", "slot_logits", "intent_pred", "slot_pred"):
        assert bool(jnp.allclose(out[name], ref[name], atol=2e-3, rtol=2e-2)), name
    print("KERNEL_OK")
</pallas_src>

<mosaic_0001>
module attributes {stable_mosaic.version = 11 : i64} {
  func.func @phobert_bio_kernel(%arg0: i32, %arg1: memref<16x32xf32, #tpu.memory_space<vmem>>, %arg2: memref<4x1x8xf32, #tpu.memory_space<vmem>>, %arg3: memref<744x128xf32, #tpu.memory_space<vmem>>, %arg4: memref<16x128xf32, #tpu.memory_space<vmem>>) attributes {dimension_semantics = [#tpu.dimension_semantics<arbitrary>], iteration_bounds = array<i64: 1>, scalar_prefetch = 0 : i64, scratch_operands = 0 : i64, tpu.core_type = #tpu.core_type<tc>, window_params = [{pipeline_mode = #tpu.pipeline_mode<synchronous>, transform_indices = @transform_0, window_bounds = array<i64: 16, 32>}, {pipeline_mode = #tpu.pipeline_mode<synchronous>, transform_indices = @transform_1, window_bounds = array<i64: 4, 1, 8>}, {pipeline_mode = #tpu.pipeline_mode<synchronous>, transform_indices = @transform_2, window_bounds = array<i64: 744, 128>}, {pipeline_mode = #tpu.pipeline_mode<synchronous>, transform_indices = @transform_3, window_bounds = array<i64: 16, 128>}]} {
    %c0 = arith.constant 0 : index
    %c0_0 = arith.constant 0 : index
    %c0_1 = arith.constant 0 : index
    %0 = vector.load %arg2[%c0, %c0_0, %c0_1] : memref<4x1x8xf32, #tpu.memory_space<vmem>>, vector<4x1x8xf32>
    %c0_2 = arith.constant 0 : index
    %c0_3 = arith.constant 0 : index
    %1 = vector.load %arg1[%c0_2, %c0_3] : memref<16x32xf32, #tpu.memory_space<vmem>>, vector<16x32xf32>
    %c0_4 = arith.constant 0 : index
    %c0_5 = arith.constant 0 : index
    %2 = vector.load %arg3[%c0_4, %c0_5] : memref<744x128xf32, #tpu.memory_space<vmem>>, vector<1x32xf32>
    %c8 = arith.constant 8 : index
    %c0_6 = arith.constant 0 : index
    %3 = vector.load %arg3[%c8, %c0_6] : memref<744x128xf32, #tpu.memory_space<vmem>>, vector<1x32xf32>
    %cst = arith.constant dense<0.000000e+00> : vector<16xf32>
    %4 = vector.multi_reduction <add>, %1, %cst [1] : vector<16x32xf32> to vector<16xf32>
    %5 = vector.shape_cast %4 : vector<16xf32> to vector<16x1xf32>
    %cst_7 = arith.constant 3.200000e+01 : f32
    %6 = vector.broadcast %cst_7 : f32 to vector<16x1xf32>
    %7 = arith.divf %5, %6 : vector<16x1xf32>
    %8 = vector.broadcast %7 : vector<16x1xf32> to vector<16x32xf32>
    %9 = arith.subf %1, %8 : vector<16x32xf32>
    %10 = arith.mulf %9, %9 : vector<16x32xf32>
    %cst_8 = arith.constant dense<0.000000e+00> : vector<16xf32>
    %11 = vector.multi_reduction <add>, %10, %cst_8 [1] : vector<16x32xf32> to vector<16xf32>
    %12 = vector.shape_cast %11 : vector<16xf32> to vector<16x1xf32>
    %cst_9 = arith.constant 3.200000e+01 : f32
    %13 = vector.broadcast %cst_9 : f32 to vector<16x1xf32>
    %14 = arith.divf %12, %13 : vector<16x1xf32>
    %15 = vector.broadcast %7 : vector<16x1xf32> to vector<16x32xf32>
    %16 = arith.subf %1, %15 : vector<16x32xf32>
    %cst_10 = arith.constant 9.99999974E-6 : f32
    %17 = vector.broadcast %cst_10 : f32 to vector<16x1xf32>
    %18 = arith.addf %14, %17 : vector<16x1xf32>
    %19 = math.rsqrt %18 : vector<16x1xf32>
    %20 = vector.broadcast %19 : vector<16x1xf32> to vector<16x32xf32>
    %21 = arith.mulf %16, %20 : vector<16x32xf32>
    %22 = vector.broadcast %2 : vector<1x32xf32> to vector<16x32xf32>
    %23 = arith.mulf %21, %22 : vector<16x32xf32>
    %24 = vector.broadcast %3 : vector<1x32xf32> to vector<16x32xf32>
    %25 = arith.addf %23, %24 : vector<16x32xf32>
    %c16 = arith.constant 16 : index
    %c0_11 = arith.constant 0 : index
    %26 = vector.load %arg3[%c16, %c0_11] : memref<744x128xf32, #tpu.memory_space<vmem>>, vector<32x32xf32>
    %cst_12 = arith.constant dense<0.000000e+00> : vector<16x32xf32>
    %27 = tpu.matmul %25, %26, %cst_12 {dimension_numbers = #tpu.dot_dimension_numbers<[1], [0], [0], [1], [0, 0, 1, 1], [], []>} : vector<16x32xf32>, vector<32x32xf32>, vector<16x32xf32> -> vector<16x32xf32>
    %c240 = arith.constant 240 : index
    %c0_13 = arith.constant 0 : index
    %28 = vector.load %arg3[%c240, %c0_13] : memref<744x128xf32, #tpu.memory_space<vmem>>, vector<1x32xf32>
    %29 = vector.broadcast %28 : vector<1x32xf32> to vector<16x32xf32>
    %30 = arith.addf %27, %29 : vector<16x32xf32>
    %c48 = arith.constant 48 : index
    %c0_14 = arith.constant 0 : index
    %31 = vector.load %arg3[%c48, %c0_14] : memref<744x128xf32, #tpu.memory_space<vmem>>, vector<32x32xf32>
    %cst_15 = arith.constant dense<0.000000e+00> : vector<16x32xf32>
    %32 = tpu.matmul %25, %31, %cst_15 {dimension_numbers = #tpu.dot_dimension_numbers<[1], [0], [0], [1], [0, 0, 1, 1], [], []>} : vector<16x32xf32>, vector<32x32xf32>, vector<16x32xf32> -> vector<16x32xf32>
    %c248 = arith.constant 248 : index
    %c0_16 = arith.constant 0 : index
    %33 = vector.load %arg3[%c248, %c0_16] : memref<744x128xf32, #tpu.memory_space<vmem>>, vector<1x32xf32>
    %34 = vector.broadcast %33 : vector<1x32xf32> to vector<16x32xf32>
    %35 = arith.addf %32, %34 : vector<16x32xf32>
    %c80 = arith.constant 80 : index
    %c0_17 = arith.constant 0 : index
    %36 = vector.load %arg3[%c80, %c0_17] : memref<744x128xf32, #tpu.memory_space<vmem>>, vector<32x32xf32>
    %cst_18 = arith.constant dense<0.000000e+00> : vector<16x32xf32>
    %37 = tpu.matmul %25, %36, %cst_18 {dimension_numbers = #tpu.dot_dimension_numbers<[1], [0], [0], [1], [0, 0, 1, 1], [], []>} : vector<16x32xf32>, vector<32x32xf32>, vector<16x32xf32> -> vector<16x32xf32>
    %c256 = arith.constant 256 : index
    %c0_19 = arith.constant 0 : index
    %38 = vector.load %arg3[%c256, %c0_19] : memref<744x128xf32, #tpu.memory_space<vmem>>, vector<1x32xf32>
    %39 = vector.broadcast %38 : vector<1x32xf32> to vector<16x32xf32>
    %40 = arith.addf %37, %39 : vector<16x32xf32>
    %41 = vector.extract_strided_slice %30 {offsets = [0, 0], sizes = [16, 16], strides = [1, 1]} : vector<16x32xf32> to vector<16x16xf32>
    %42 = vector.shape_cast %41 : vector<16x16xf32> to vector<1x2x8x16xf32>
    %43 = vector.extract_strided_slice %30 {offsets = [0, 16], sizes = [16, 16], strides = [1, 1]} : vector<16x32xf32> to vector<16x16xf32>
    %44 = vector.shape_cast %43 : vector<16x16xf32> to vector<1x2x8x16xf32>
    %45 = tpu.concatenate %42, %44 in 0 : vector<1x2x8x16xf32>, vector<1x2x8x16xf32> -> vector<2x2x8x16xf32>
    %46 = vector.shape_cast %45 : vector<2x2x8x16xf32> to vector<4x8x16xf32>
    %47 = vector.extract_strided_slice %35 {offsets = [0, 0], sizes = [16, 16], strides = [1, 1]} : vector<16x32xf32> to vector<16x16xf32>
    %48 = vector.shape_cast %47 : vector<16x16xf32> to vector<1x2x8x16xf32>
    %49 = vector.extract_strided_slice %35 {offsets = [0, 16], sizes = [16, 16], strides = [1, 1]} : vector<16x32xf32> to vector<16x16xf32>
    %50 = vector.shape_cast %49 : vector<16x16xf32> to vector<1x2x8x16xf32>
    %51 = tpu.concatenate %48, %50 in 0 : vector<1x2x8x16xf32>, vector<1x2x8x16xf32> -> vector<2x2x8x16xf32>
    %52 = vector.shape_cast %51 : vector<2x2x8x16xf32> to vector<4x8x16xf32>
    %53 = vector.extract_strided_slice %40 {offsets = [0, 0], sizes = [16, 16], strides = [1, 1]} : vector<16x32xf32> to vector<16x16xf32>
    %54 = vector.shape_cast %53 : vector<16x16xf32> to vector<1x2x8x16xf32>
    %55 = vector.extract_strided_slice %40 {offsets = [0, 16], sizes = [16, 16], strides = [1, 1]} : vector<16x32xf32> to vector<16x16xf32>
    %56 = vector.shape_cast %55 : vector<16x16xf32> to vector<1x2x8x16xf32>
    %57 = tpu.concatenate %54, %56 in 0 : vector<1x2x8x16xf32>, vector<1x2x8x16xf32> -> vector<2x2x8x16xf32>
    %58 = vector.shape_cast %57 : vector<2x2x8x16xf32> to vector<4x8x16xf32>
    "tpu.trace_start"() <{level = 10 : i32, message = "bqd,bkd->bqk"}> : () -> ()
    %cst_20 = arith.constant dense<0.000000e+00> : vector<4x8x8xf32>
    %59 = tpu.matmul %46, %52, %cst_20 {dimension_numbers = #tpu.dot_dimension_numbers<[2], [2], [1], [1], [0, 0, 0, 1, 1, 1], [0], [0]>} : vector<4x8x16xf32>, vector<4x8x16xf32>, vector<4x8x8xf32> -> vector<4x8x8xf32>
    "tpu.trace_stop"() : () -> ()
    %cst_21 = arith.constant 2.500000e-01 : f32
    %60 = vector.broadcast %cst_21 : f32 to vector<4x8x8xf32>
    %61 = arith.mulf %59, %60 : vector<4x8x8xf32>
    %62 = vector.broadcast %0 : vector<4x1x8xf32> to vector<4x8x8xf32>
    %63 = arith.addf %61, %62 : vector<4x8x8xf32>
    %cst_22 = arith.constant dense<0xFF800000> : vector<4x8xf32>
    %64 = vector.multi_reduction <maximumf>, %63, %cst_22 [2] : vector<4x8x8xf32> to vector<4x8xf32>
    %cst_23 = arith.constant 0xFF800000 : f32
    %65 = vector.broadcast %cst_23 : f32 to vector<4x8xf32>
    %66 = arith.maximumf %65, %64 : vector<4x8xf32>
    %67 = vector.shape_cast %66 : vector<4x8xf32> to vector<4x8x1xf32>
    %68 = vector.broadcast %67 : vector<4x8x1xf32> to vector<4x8x8xf32>
    %69 = arith.subf %63, %68 : vector<4x8x8xf32>
    %70 = math.exp %69 : vector<4x8x8xf32>
    %cst_24 = arith.constant dense<0.000000e+00> : vector<4x8xf32>
    %71 = vector.multi_reduction <add>, %70, %cst_24 [2] : vector<4x8x8xf32> to vector<4x8xf32>
    %72 = vector.shape_cast %71 : vector<4x8xf32> to vector<4x8x1xf32>
    %73 = vector.broadcast %72 : vector<4x8x1xf32> to vector<4x8x8xf32>
    %74 = arith.divf %70, %73 : vector<4x8x8xf32>
    "tpu.trace_start"() <{level = 10 : i32, message = "bqk,bkd->bqd"}> : () -> ()
    %cst_25 = arith.constant dense<0.000000e+00> : vector<4x8x16xf32>
    %75 = tpu.matmul %74, %58, %cst_25 {dimension_numbers = #tpu.dot_dimension_numbers<[2], [1], [1], [2], [0, 0, 0, 1, 1, 2], [0], [0]>} : vector<4x8x8xf32>, vector<4x8x16xf32>, vector<4x8x16xf32> -> vector<4x8x16xf32>
    "tpu.trace_stop"() : () -> ()
    %76 = vector.shape_cast %75 : vector<4x8x16xf32> to vector<2x16x16xf32>
    %c264 = arith.constant 264 : index
    %c0_26 = arith.constant 0 : index
    %77 = vector.load %arg3[%c264, %c0_26] : memref<744x128xf32, #tpu.memory_space<vmem>>, vector<1x32xf32>
    %78 = vector.extract_strided_slice %76 {offsets = [0, 0, 0], sizes = [1, 16, 16], strides = [1, 1, 1]} : vector<2x16x16xf32> to vector<1x16x16xf32>
    %79 = vector.shape_cast %78 : vector<1x16x16xf32> to vector<16x16xf32>
    %c112 = arith.constant 112 : index
    %c0_27 = arith.constant 0 : index
    %80 = vector.load %arg3[%c112, %c0_27] : memref<744x128xf32, #tpu.memory_space<vmem>>, vector<16x32xf32>
    %cst_28 = arith.constant dense<0.000000e+00> : vector<16x32xf32>
    %81 = tpu.matmul %79, %80, %cst_28 {dimension_numbers = #tpu.dot_dimension_numbers<[1], [0], [0], [1], [0, 0, 1, 1], [], []>} : vector<16x16xf32>, vector<16x32xf32>, vector<16x32xf32> -> vector<16x32xf32>
    %82 = vector.broadcast %77 : vector<1x32xf32> to vector<16x32xf32>
    %83 = arith.addf %82, %81 : vector<16x32xf32>
    %84 = vector.extract_strided_slice %76 {offsets = [1, 0, 0], sizes = [1, 16, 16], strides = [1, 1, 1]} : vector<2x16x16xf32> to vector<1x16x16xf32>
    %85 = vector.shape_cast %84 : vector<1x16x16xf32> to vector<16x16xf32>
    %c128 = arith.constant 128 : index
    %c0_29 = arith.constant 0 : index
    %86 = vector.load %arg3[%c128, %c0_29] : memref<744x128xf32, #tpu.memory_space<vmem>>, vector<16x32xf32>
    %cst_30 = arith.constant dense<0.000000e+00> : vector<16x32xf32>
    %87 = tpu.matmul %85, %86, %cst_30 {dimension_numbers = #tpu.dot_dimension_numbers<[1], [0], [0], [1], [0, 0, 1, 1], [], []>} : vector<16x16xf32>, vector<16x32xf32>, vector<16x32xf32> -> vector<16x32xf32>
    %88 = arith.addf %83, %87 : vector<16x32xf32>
    %89 = arith.addf %25, %88 : vector<16x32xf32>
    %c272 = arith.constant 272 : index
    %c0_31 = arith.constant 0 : index
    %90 = vector.load %arg3[%c272, %c0_31] : memref<744x128xf32, #tpu.memory_space<vmem>>, vector<1x32xf32>
    %c280 = arith.constant 280 : index
    %c0_32 = arith.constant 0 : index
    %91 = vector.load %arg3[%c280, %c0_32] : memref<744x128xf32, #tpu.memory_space<vmem>>, vector<1x32xf32>
    %cst_33 = arith.constant dense<0.000000e+00> : vector<16xf32>
    %92 = vector.multi_reduction <add>, %89, %cst_33 [1] : vector<16x32xf32> to vector<16xf32>
    %93 = vector.shape_cast %92 : vector<16xf32> to vector<16x1xf32>
    %cst_34 = arith.constant 3.200000e+01 : f32
    %94 = vector.broadcast %cst_34 : f32 to vector<16x1xf32>
    %95 = arith.divf %93, %94 : vector<16x1xf32>
    %96 = vector.broadcast %95 : vector<16x1xf32> to vector<16x32xf32>
    %97 = arith.subf %89, %96 : vector<16x32xf32>
    %98 = arith.mulf %97, %97 : vector<16x32xf32>
    %cst_35 = arith.constant dense<0.000000e+00> : vector<16xf32>
    %99 = vector.multi_reduction <add>, %98, %cst_35 [1] : vector<16x32xf32> to vector<16xf32>
    %100 = vector.shape_cast %99 : vector<16xf32> to vector<16x1xf32>
    %cst_36 = arith.constant 3.200000e+01 : f32
    %101 = vector.broadcast %cst_36 : f32 to vector<16x1xf32>
    %102 = arith.divf %100, %101 : vector<16x1xf32>
    %103 = vector.broadcast %95 : vector<16x1xf32> to vector<16x32xf32>
    %104 = arith.subf %89, %103 : vector<16x32xf32>
    %cst_37 = arith.constant 9.99999974E-6 : f32
    %105 = vector.broadcast %cst_37 : f32 to vector<16x1xf32>
    %106 = arith.addf %102, %105 : vector<16x1xf32>
    %107 = math.rsqrt %106 : vector<16x1xf32>
    %108 = vector.broadcast %107 : vector<16x1xf32> to vector<16x32xf32>
    %109 = arith.mulf %104, %108 : vector<16x32xf32>
    %110 = vector.broadcast %90 : vector<1x32xf32> to vector<16x32xf32>
    %111 = arith.mulf %109, %110 : vector<16x32xf32>
    %112 = vector.broadcast %91 : vector<1x32xf32> to vector<16x32xf32>
    %113 = arith.addf %111, %112 : vector<16x32xf32>
    %c144 = arith.constant 144 : index
    %c0_38 = arith.constant 0 : index
    %114 = vector.load %arg3[%c144, %c0_38] : memref<744x128xf32, #tpu.memory_space<vmem>>, vector<32x64xf32>
    %cst_39 = arith.constant dense<0.000000e+00> : vector<16x64xf32>
    %115 = tpu.matmul %113, %114, %cst_39 {dimension_numbers = #tpu.dot_dimension_numbers<[1], [0], [0], [1], [0, 0, 1, 1], [], []>} : vector<16x32xf32>, vector<32x64xf32>, vector<16x64xf32> -> vector<16x64xf32>
    %c288 = arith.constant 288 : index
    %c0_40 = arith.constant 0 : index
    %116 = vector.load %arg3[%c288, %c0_40] : memref<744x128xf32, #tpu.memory_space<vmem>>, vector<1x64xf32>
    %117 = vector.broadcast %116 : vector<1x64xf32> to vector<16x64xf32>
    %118 = arith.addf %115, %117 : vector<16x64xf32>
    %119 = arith.mulf %118, %118 : vector<16x64xf32>
    %120 = arith.mulf %118, %119 : vector<16x64xf32>
    %cst_41 = arith.constant 4.471500e-02 : f32
    %121 = vector.broadcast %cst_41 : f32 to vector<16x64xf32>
    %122 = arith.mulf %121, %120 : vector<16x64xf32>
    %123 = arith.addf %118, %122 : vector<16x64xf32>
    %cst_42 = arith.constant 0.797884583 : f32
    %124 = vector.broadcast %cst_42 : f32 to vector<16x64xf32>
    %125 = arith.mulf %124, %123 : vector<16x64xf32>
    %126 = math.tanh %125 : vector<16x64xf32>
    %cst_43 = arith.constant 1.000000e+00 : f32
    %127 = vector.broadcast %cst_43 : f32 to vector<16x64xf32>
    %128 = arith.addf %127, %126 : vector<16x64xf32>
    %cst_44 = arith.constant 5.000000e-01 : f32
    %129 = vector.broadcast %cst_44 : f32 to vector<16x64xf32>
    %130 = arith.mulf %129, %128 : vector<16x64xf32>
    %131 = arith.mulf %118, %130 : vector<16x64xf32>
    %c176 = arith.constant 176 : index
    %c0_45 = arith.constant 0 : index
    %132 = vector.load %arg3[%c176, %c0_45] : memref<744x128xf32, #tpu.memory_space<vmem>>, vector<64x32xf32>
    %cst_46 = arith.constant dense<0.000000e+00> : vector<16x32xf32>
    %133 = tpu.matmul %131, %132, %cst_46 {dimension_numbers = #tpu.dot_dimension_numbers<[1], [0], [0], [1], [0, 0, 1, 1], [], []>} : vector<16x64xf32>, vector<64x32xf32>, vector<16x32xf32> -> vector<16x32xf32>
    %c296 = arith.constant 296 : index
    %c0_47 = arith.constant 0 : index
    %134 = vector.load %arg3[%c296, %c0_47] : memref<744x128xf32, #tpu.memory_space<vmem>>, vector<1x32xf32>
    %135 = vector.broadcast %134 : vector<1x32xf32> to vector<16x32xf32>
    %136 = arith.addf %133, %135 : vector<16x32xf32>
    %137 = arith.addf %113, %136 : vector<16x32xf32>
    %c304 = arith.constant 304 : index
    %c0_48 = arith.constant 0 : index
    %138 = vector.load %arg3[%c304, %c0_48] : memref<744x128xf32, #tpu.memory_space<vmem>>, vector<1x32xf32>
    %c312 = arith.constant 312 : index
    %c0_49 = arith.constant 0 : index
    %139 = vector.load %arg3[%c312, %c0_49] : memref<744x128xf32, #tpu.memory_space<vmem>>, vector<1x32xf32>
    %cst_50 = arith.constant dense<0.000000e+00> : vector<16xf32>
    %140 = vector.multi_reduction <add>, %137, %cst_50 [1] : vector<16x32xf32> to vector<16xf32>
    %141 = vector.shape_cast %140 : vector<16xf32> to vector<16x1xf32>
    %cst_51 = arith.constant 3.200000e+01 : f32
    %142 = vector.broadcast %cst_51 : f32 to vector<16x1xf32>
    %143 = arith.divf %141, %142 : vector<16x1xf32>
    %144 = vector.broadcast %143 : vector<16x1xf32> to vector<16x32xf32>
    %145 = arith.subf %137, %144 : vector<16x32xf32>
    %146 = arith.mulf %145, %145 : vector<16x32xf32>
    %cst_52 = arith.constant dense<0.000000e+00> : vector<16xf32>
    %147 = vector.multi_reduction <add>, %146, %cst_52 [1] : vector<16x32xf32> to vector<16xf32>
    %148 = vector.shape_cast %147 : vector<16xf32> to vector<16x1xf32>
    %cst_53 = arith.constant 3.200000e+01 : f32
    %149 = vector.broadcast %cst_53 : f32 to vector<16x1xf32>
    %150 = arith.divf %148, %149 : vector<16x1xf32>
    %151 = vector.broadcast %143 : vector<16x1xf32> to vector<16x32xf32>
    %152 = arith.subf %137, %151 : vector<16x32xf32>
    %cst_54 = arith.constant 9.99999974E-6 : f32
    %153 = vector.broadcast %cst_54 : f32 to vector<16x1xf32>
    %154 = arith.addf %150, %153 : vector<16x1xf32>
    %155 = math.rsqrt %154 : vector<16x1xf32>
    %156 = vector.broadcast %155 : vector<16x1xf32> to vector<16x32xf32>
    %157 = arith.mulf %152, %156 : vector<16x32xf32>
    %158 = vector.broadcast %138 : vector<1x32xf32> to vector<16x32xf32>
    %159 = arith.mulf %157, %158 : vector<16x32xf32>
    %160 = vector.broadcast %139 : vector<1x32xf32> to vector<16x32xf32>
    %161 = arith.addf %159, %160 : vector<16x32xf32>
    %c320 = arith.constant 320 : index
    %c0_55 = arith.constant 0 : index
    %162 = vector.load %arg3[%c320, %c0_55] : memref<744x128xf32, #tpu.memory_space<vmem>>, vector<32x32xf32>
    %cst_56 = arith.constant dense<0.000000e+00> : vector<16x32xf32>
    %163 = tpu.matmul %161, %162, %cst_56 {dimension_numbers = #tpu.dot_dimension_numbers<[1], [0], [0], [1], [0, 0, 1, 1], [], []>} : vector<16x32xf32>, vector<32x32xf32>, vector<16x32xf32> -> vector<16x32xf32>
    %c544 = arith.constant 544 : index
    %c0_57 = arith.constant 0 : index
    %164 = vector.load %arg3[%c544, %c0_57] : memref<744x128xf32, #tpu.memory_space<vmem>>, vector<1x32xf32>
    %165 = vector.broadcast %164 : vector<1x32xf32> to vector<16x32xf32>
    %166 = arith.addf %163, %165 : vector<16x32xf32>
    %c352 = arith.constant 352 : index
    %c0_58 = arith.constant 0 : index
    %167 = vector.load %arg3[%c352, %c0_58] : memref<744x128xf32, #tpu.memory_space<vmem>>, vector<32x32xf32>
    %cst_59 = arith.constant dense<0.000000e+00> : vector<16x32xf32>
    %168 = tpu.matmul %161, %167, %cst_59 {dimension_numbers = #tpu.dot_dimension_numbers<[1], [0], [0], [1], [0, 0, 1, 1], [], []>} : vector<16x32xf32>, vector<32x32xf32>, vector<16x32xf32> -> vector<16x32xf32>
    %c552 = arith.constant 552 : index
    %c0_60 = arith.constant 0 : index
    %169 = vector.load %arg3[%c552, %c0_60] : memref<744x128xf32, #tpu.memory_space<vmem>>, vector<1x32xf32>
    %170 = vector.broadcast %169 : vector<1x32xf32> to vector<16x32xf32>
    %171 = arith.addf %168, %170 : vector<16x32xf32>
    %c384 = arith.constant 384 : index
    %c0_61 = arith.constant 0 : index
    %172 = vector.load %arg3[%c384, %c0_61] : memref<744x128xf32, #tpu.memory_space<vmem>>, vector<32x32xf32>
    %cst_62 = arith.constant dense<0.000000e+00> : vector<16x32xf32>
    %173 = tpu.matmul %161, %172, %cst_62 {dimension_numbers = #tpu.dot_dimension_numbers<[1], [0], [0], [1], [0, 0, 1, 1], [], []>} : vector<16x32xf32>, vector<32x32xf32>, vector<16x32xf32> -> vector<16x32xf32>
    %c560 = arith.constant 560 : index
    %c0_63 = arith.constant 0 : index
    %174 = vector.load %arg3[%c560, %c0_63] : memref<744x128xf32, #tpu.memory_space<vmem>>, vector<1x32xf32>
    %175 = vector.broadcast %174 : vector<1x32xf32> to vector<16x32xf32>
    %176 = arith.addf %173, %175 : vector<16x32xf32>
    %177 = vector.extract_strided_slice %166 {offsets = [0, 0], sizes = [16, 16], strides = [1, 1]} : vector<16x32xf32> to vector<16x16xf32>
    %178 = vector.shape_cast %177 : vector<16x16xf32> to vector<1x2x8x16xf32>
    %179 = vector.extract_strided_slice %166 {offsets = [0, 16], sizes = [16, 16], strides = [1, 1]} : vector<16x32xf32> to vector<16x16xf32>
    %180 = vector.shape_cast %179 : vector<16x16xf32> to vector<1x2x8x16xf32>
    %181 = tpu.concatenate %178, %180 in 0 : vector<1x2x8x16xf32>, vector<1x2x8x16xf32> -> vector<2x2x8x16xf32>
    %182 = vector.shape_cast %181 : vector<2x2x8x16xf32> to vector<4x8x16xf32>
    %183 = vector.extract_strided_slice %171 {offsets = [0, 0], sizes = [16, 16], strides = [1, 1]} : vector<16x32xf32> to vector<16x16xf32>
    %184 = vector.shape_cast %183 : vector<16x16xf32> to vector<1x2x8x16xf32>
    %185 = vector.extract_strided_slice %171 {offsets = [0, 16], sizes = [16, 16], strides = [1, 1]} : vector<16x32xf32> to vector<16x16xf32>
    %186 = vector.shape_cast %185 : vector<16x16xf32> to vector<1x2x8x16xf32>
    %187 = tpu.concatenate %184, %186 in 0 : vector<1x2x8x16xf32>, vector<1x2x8x16xf32> -> vector<2x2x8x16xf32>
    %188 = vector.shape_cast %187 : vector<2x2x8x16xf32> to vector<4x8x16xf32>
    %189 = vector.extract_strided_slice %176 {offsets = [0, 0], sizes = [16, 16], strides = [1, 1]} : vector<16x32xf32> to vector<16x16xf32>
    %190 = vector.shape_cast %189 : vector<16x16xf32> to vector<1x2x8x16xf32>
    %191 = vector.extract_strided_slice %176 {offsets = [0, 16], sizes = [16, 16], strides = [1, 1]} : vector<16x32xf32> to vector<16x16xf32>
    %192 = vector.shape_cast %191 : vector<16x16xf32> to vector<1x2x8x16xf32>
    %193 = tpu.concatenate %190, %192 in 0 : vector<1x2x8x16xf32>, vector<1x2x8x16xf32> -> vector<2x2x8x16xf32>
    %194 = vector.shape_cast %193 : vector<2x2x8x16xf32> to vector<4x8x16xf32>
    "tpu.trace_start"() <{level = 10 : i32, message = "bqd,bkd->bqk"}> : () -> ()
    %cst_64 = arith.constant dense<0.000000e+00> : vector<4x8x8xf32>
    %195 = tpu.matmul %182, %188, %cst_64 {dimension_numbers = #tpu.dot_dimension_numbers<[2], [2], [1], [1], [0, 0, 0, 1, 1, 1], [0], [0]>} : vector<4x8x16xf32>, vector<4x8x16xf32>, vector<4x8x8xf32> -> vector<4x8x8xf32>
    "tpu.trace_stop"() : () -> ()
    %cst_65 = arith.constant 2.500000e-01 : f32
    %196 = vector.broadcast %cst_65 : f32 to vector<4x8x8xf32>
    %197 = arith.mulf %195, %196 : vector<4x8x8xf32>
    %198 = vector.broadcast %0 : vector<4x1x8xf32> to vector<4x8x8xf32>
    %199 = arith.addf %197, %198 : vector<4x8x8xf32>
    %cst_66 = arith.constant dense<0xFF800000> : vector<4x8xf32>
    %200 = vector.multi_reduction <maximumf>, %199, %cst_66 [2] : vector<4x8x8xf32> to vector<4x8xf32>
    %cst_67 = arith.constant 0xFF800000 : f32
    %201 = vector.broadcast %cst_67 : f32 to vector<4x8xf32>
    %202 = arith.maximumf %201, %200 : vector<4x8xf32>
    %203 = vector.shape_cast %202 : vector<4x8xf32> to vector<4x8x1xf32>
    %204 = vector.broadcast %203 : vector<4x8x1xf32> to vector<4x8x8xf32>
    %205 = arith.subf %199, %204 : vector<4x8x8xf32>
    %206 = math.exp %205 : vector<4x8x8xf32>
    %cst_68 = arith.constant dense<0.000000e+00> : vector<4x8xf32>
    %207 = vector.multi_reduction <add>, %206, %cst_68 [2] : vector<4x8x8xf32> to vector<4x8xf32>
    %208 = vector.shape_cast %207 : vector<4x8xf32> to vector<4x8x1xf32>
    %209 = vector.broadcast %208 : vector<4x8x1xf32> to vector<4x8x8xf32>
    %210 = arith.divf %206, %209 : vector<4x8x8xf32>
    "tpu.trace_start"() <{level = 10 : i32, message = "bqk,bkd->bqd"}> : () -> ()
    %cst_69 = arith.constant dense<0.000000e+00> : vector<4x8x16xf32>
    %211 = tpu.matmul %210, %194, %cst_69 {dimension_numbers = #tpu.dot_dimension_numbers<[2], [1], [1], [2], [0, 0, 0, 1, 1, 2], [0], [0]>} : vector<4x8x8xf32>, vector<4x8x16xf32>, vector<4x8x16xf32> -> vector<4x8x16xf32>
    "tpu.trace_stop"() : () -> ()
    %212 = vector.shape_cast %211 : vector<4x8x16xf32> to vector<2x16x16xf32>
    %c568 = arith.constant 568 : index
    %c0_70 = arith.constant 0 : index
    %213 = vector.load %arg3[%c568, %c0_70] : memref<744x128xf32, #tpu.memory_space<vmem>>, vector<1x32xf32>
    %214 = vector.extract_strided_slice %212 {offsets = [0, 0, 0], sizes = [1, 16, 16], strides = [1, 1, 1]} : vector<2x16x16xf32> to vector<1x16x16xf32>
    %215 = vector.shape_cast %214 : vector<1x16x16xf32> to vector<16x16xf32>
    %c416 = arith.constant 416 : index
    %c0_71 = arith.constant 0 : index
    %216 = vector.load %arg3[%c416, %c0_71] : memref<744x128xf32, #tpu.memory_space<vmem>>, vector<16x32xf32>
    %cst_72 = arith.constant dense<0.000000e+00> : vector<16x32xf32>
    %217 = tpu.matmul %215, %216, %cst_72 {dimension_numbers = #tpu.dot_dimension_numbers<[1], [0], [0], [1], [0, 0, 1, 1], [], []>} : vector<16x16xf32>, vector<16x32xf32>, vector<16x32xf32> -> vector<16x32xf32>
    %218 = vector.broadcast %213 : vector<1x32xf32> to vector<16x32xf32>
    %219 = arith.addf %218, %217 : vector<16x32xf32>
    %220 = vector.extract_strided_slice %212 {offsets = [1, 0, 0], sizes = [1, 16, 16], strides = [1, 1, 1]} : vector<2x16x16xf32> to vector<1x16x16xf32>
    %221 = vector.shape_cast %220 : vector<1x16x16xf32> to vector<16x16xf32>
    %c432 = arith.constant 432 : index
    %c0_73 = arith.constant 0 : index
    %222 = vector.load %arg3[%c432, %c0_73] : memref<744x128xf32, #tpu.memory_space<vmem>>, vector<16x32xf32>
    %cst_74 = arith.constant dense<0.000000e+00> : vector<16x32xf32>
    %223 = tpu.matmul %221, %222, %cst_74 {dimension_numbers = #tpu.dot_dimension_numbers<[1], [0], [0], [1], [0, 0, 1, 1], [], []>} : vector<16x16xf32>, vector<16x32xf32>, vector<16x32xf32> -> vector<16x32xf32>
    %224 = arith.addf %219, %223 : vector<16x32xf32>
    %225 = arith.addf %161, %224 : vector<16x32xf32>
    %c576 = arith.constant 576 : index
    %c0_75 = arith.constant 0 : index
    %226 = vector.load %arg3[%c576, %c0_75] : memref<744x128xf32, #tpu.memory_space<vmem>>, vector<1x32xf32>
    %c584 = arith.constant 584 : index
    %c0_76 = arith.constant 0 : index
    %227 = vector.load %arg3[%c584, %c0_76] : memref<744x128xf32, #tpu.memory_space<vmem>>, vector<1x32xf32>
    %cst_77 = arith.constant dense<0.000000e+00> : vector<16xf32>
    %228 = vector.multi_reduction <add>, %225, %cst_77 [1] : vector<16x32xf32> to vector<16xf32>
    %229 = vector.shape_cast %228 : vector<16xf32> to vector<16x1xf32>
    %cst_78 = arith.constant 3.200000e+01 : f32
    %230 = vector.broadcast %cst_78 : f32 to vector<16x1xf32>
    %231 = arith.divf %229, %230 : vector<16x1xf32>
    %232 = vector.broadcast %231 : vector<16x1xf32> to vector<16x32xf32>
    %233 = arith.subf %225, %232 : vector<16x32xf32>
    %234 = arith.mulf %233, %233 : vector<16x32xf32>
    %cst_79 = arith.constant dense<0.000000e+00> : vector<16xf32>
    %235 = vector.multi_reduction <add>, %234, %cst_79 [1] : vector<16x32xf32> to vector<16xf32>
    %236 = vector.shape_cast %235 : vector<16xf32> to vector<16x1xf32>
    %cst_80 = arith.constant 3.200000e+01 : f32
    %237 = vector.broadcast %cst_80 : f32 to vector<16x1xf32>
    %238 = arith.divf %236, %237 : vector<16x1xf32>
    %239 = vector.broadcast %231 : vector<16x1xf32> to vector<16x32xf32>
    %240 = arith.subf %225, %239 : vector<16x32xf32>
    %cst_81 = arith.constant 9.99999974E-6 : f32
    %241 = vector.broadcast %cst_81 : f32 to vector<16x1xf32>
    %242 = arith.addf %238, %241 : vector<16x1xf32>
    %243 = math.rsqrt %242 : vector<16x1xf32>
    %244 = vector.broadcast %243 : vector<16x1xf32> to vector<16x32xf32>
    %245 = arith.mulf %240, %244 : vector<16x32xf32>
    %246 = vector.broadcast %226 : vector<1x32xf32> to vector<16x32xf32>
    %247 = arith.mulf %245, %246 : vector<16x32xf32>
    %248 = vector.broadcast %227 : vector<1x32xf32> to vector<16x32xf32>
    %249 = arith.addf %247, %248 : vector<16x32xf32>
    %c448 = arith.constant 448 : index
    %c0_82 = arith.constant 0 : index
    %250 = vector.load %arg3[%c448, %c0_82] : memref<744x128xf32, #tpu.memory_space<vmem>>, vector<32x64xf32>
    %cst_83 = arith.constant dense<0.000000e+00> : vector<16x64xf32>
    %251 = tpu.matmul %249, %250, %cst_83 {dimension_numbers = #tpu.dot_dimension_numbers<[1], [0], [0], [1], [0, 0, 1, 1], [], []>} : vector<16x32xf32>, vector<32x64xf32>, vector<16x64xf32> -> vector<16x64xf32>
    %c592 = arith.constant 592 : index
    %c0_84 = arith.constant 0 : index
    %252 = vector.load %arg3[%c592, %c0_84] : memref<744x128xf32, #tpu.memory_space<vmem>>, vector<1x64xf32>
    %253 = vector.broadcast %252 : vector<1x64xf32> to vector<16x64xf32>
    %254 = arith.addf %251, %253 : vector<16x64xf32>
    %255 = arith.mulf %254, %254 : vector<16x64xf32>
    %256 = arith.mulf %254, %255 : vector<16x64xf32>
    %cst_85 = arith.constant 4.471500e-02 : f32
    %257 = vector.broadcast %cst_85 : f32 to vector<16x64xf32>
    %258 = arith.mulf %257, %256 : vector<16x64xf32>
    %259 = arith.addf %254, %258 : vector<16x64xf32>
    %cst_86 = arith.constant 0.797884583 : f32
    %260 = vector.broadcast %cst_86 : f32 to vector<16x64xf32>
    %261 = arith.mulf %260, %259 : vector<16x64xf32>
    %262 = math.tanh %261 : vector<16x64xf32>
    %cst_87 = arith.constant 1.000000e+00 : f32
    %263 = vector.broadcast %cst_87 : f32 to vector<16x64xf32>
    %264 = arith.addf %263, %262 : vector<16x64xf32>
    %cst_88 = arith.constant 5.000000e-01 : f32
    %265 = vector.broadcast %cst_88 : f32 to vector<16x64xf32>
    %266 = arith.mulf %265, %264 : vector<16x64xf32>
    %267 = arith.mulf %254, %266 : vector<16x64xf32>
    %c480 = arith.constant 480 : index
    %c0_89 = arith.constant 0 : index
    %268 = vector.load %arg3[%c480, %c0_89] : memref<744x128xf32, #tpu.memory_space<vmem>>, vector<64x32xf32>
    %cst_90 = arith.constant dense<0.000000e+00> : vector<16x32xf32>
    %269 = tpu.matmul %267, %268, %cst_90 {dimension_numbers = #tpu.dot_dimension_numbers<[1], [0], [0], [1], [0, 0, 1, 1], [], []>} : vector<16x64xf32>, vector<64x32xf32>, vector<16x32xf32> -> vector<16x32xf32>
    %c600 = arith.constant 600 : index
    %c0_91 = arith.constant 0 : index
    %270 = vector.load %arg3[%c600, %c0_91] : memref<744x128xf32, #tpu.memory_space<vmem>>, vector<1x32xf32>
    %271 = vector.broadcast %270 : vector<1x32xf32> to vector<16x32xf32>
    %272 = arith.addf %269, %271 : vector<16x32xf32>
    %273 = arith.addf %249, %272 : vector<16x32xf32>
    %c608 = arith.constant 608 : index
    %c0_92 = arith.constant 0 : index
    %274 = vector.load %arg3[%c608, %c0_92] : memref<744x128xf32, #tpu.memory_space<vmem>>, vector<1x32xf32>
    %c616 = arith.constant 616 : index
    %c0_93 = arith.constant 0 : index
    %275 = vector.load %arg3[%c616, %c0_93] : memref<744x128xf32, #tpu.memory_space<vmem>>, vector<1x32xf32>
    %cst_94 = arith.constant dense<0.000000e+00> : vector<16xf32>
    %276 = vector.multi_reduction <add>, %273, %cst_94 [1] : vector<16x32xf32> to vector<16xf32>
    %277 = vector.shape_cast %276 : vector<16xf32> to vector<16x1xf32>
    %cst_95 = arith.constant 3.200000e+01 : f32
    %278 = vector.broadcast %cst_95 : f32 to vector<16x1xf32>
    %279 = arith.divf %277, %278 : vector<16x1xf32>
    %280 = vector.broadcast %279 : vector<16x1xf32> to vector<16x32xf32>
    %281 = arith.subf %273, %280 : vector<16x32xf32>
    %282 = arith.mulf %281, %281 : vector<16x32xf32>
    %cst_96 = arith.constant dense<0.000000e+00> : vector<16xf32>
    %283 = vector.multi_reduction <add>, %282, %cst_96 [1] : vector<16x32xf32> to vector<16xf32>
    %284 = vector.shape_cast %283 : vector<16xf32> to vector<16x1xf32>
    %cst_97 = arith.constant 3.200000e+01 : f32
    %285 = vector.broadcast %cst_97 : f32 to vector<16x1xf32>
    %286 = arith.divf %284, %285 : vector<16x1xf32>
    %287 = vector.broadcast %279 : vector<16x1xf32> to vector<16x32xf32>
    %288 = arith.subf %273, %287 : vector<16x32xf32>
    %cst_98 = arith.constant 9.99999974E-6 : f32
    %289 = vector.broadcast %cst_98 : f32 to vector<16x1xf32>
    %290 = arith.addf %286, %289 : vector<16x1xf32>
    %291 = math.rsqrt %290 : vector<16x1xf32>
    %292 = vector.broadcast %291 : vector<16x1xf32> to vector<16x32xf32>
    %293 = arith.mulf %288, %292 : vector<16x32xf32>
    %294 = vector.broadcast %274 : vector<1x32xf32> to vector<16x32xf32>
    %295 = arith.mulf %293, %294 : vector<16x32xf32>
    %296 = vector.broadcast %275 : vector<1x32xf32> to vector<16x32xf32>
    %297 = arith.addf %295, %296 : vector<16x32xf32>
    %c624 = arith.constant 624 : index
    %c0_99 = arith.constant 0 : index
    %298 = vector.load %arg3[%c624, %c0_99] : memref<744x128xf32, #tpu.memory_space<vmem>>, vector<32x32xf32>
    %cst_100 = arith.constant dense<0.000000e+00> : vector<16x32xf32>
    %299 = tpu.matmul %297, %298, %cst_100 {dimension_numbers = #tpu.dot_dimension_numbers<[1], [0], [0], [1], [0, 0, 1, 1], [], []>} : vector<16x32xf32>, vector<32x32xf32>, vector<16x32xf32> -> vector<16x32xf32>
    %c720 = arith.constant 720 : index
    %c0_101 = arith.constant 0 : index
    %300 = vector.load %arg3[%c720, %c0_101] : memref<744x128xf32, #tpu.memory_space<vmem>>, vector<1x32xf32>
    %301 = vector.broadcast %300 : vector<1x32xf32> to vector<16x32xf32>
    %302 = arith.addf %299, %301 : vector<16x32xf32>
    %303 = math.tanh %302 : vector<16x32xf32>
    %c656 = arith.constant 656 : index
    %c0_102 = arith.constant 0 : index
    %304 = vector.load %arg3[%c656, %c0_102] : memref<744x128xf32, #tpu.memory_space<vmem>>, vector<32x4xf32>
    %cst_103 = arith.constant dense<0.000000e+00> : vector<16x4xf32>
    %305 = tpu.matmul %303, %304, %cst_103 {dimension_numbers = #tpu.dot_dimension_numbers<[1], [0], [0], [1], [0, 0, 1, 1], [], []>} : vector<16x32xf32>, vector<32x4xf32>, vector<16x4xf32> -> vector<16x4xf32>
    %c728 = arith.constant 728 : index
    %c0_104 = arith.constant 0 : index
    %306 = vector.load %arg3[%c728, %c0_104] : memref<744x128xf32, #tpu.memory_space<vmem>>, vector<1x4xf32>
    %307 = vector.broadcast %306 : vector<1x4xf32> to vector<16x4xf32>
    %308 = arith.addf %305, %307 : vector<16x4xf32>
    %cst_105 = arith.constant dense<0xFF800000> : vector<16xf32>
    %309 = vector.multi_reduction <maximumf>, %308, %cst_105 [1] : vector<16x4xf32> to vector<16xf32>
    %cst_106 = arith.constant 0xFF800000 : f32
    %310 = vector.broadcast %cst_106 : f32 to vector<16xf32>
    %311 = arith.maximumf %310, %309 : vector<16xf32>
    %312 = vector.shape_cast %311 : vector<16xf32> to vector<16x1xf32>
    %313 = vector.broadcast %312 : vector<16x1xf32> to vector<16x4xf32>
    %314 = arith.subf %308, %313 : vector<16x4xf32>
    %315 = math.exp %314 : vector<16x4xf32>
    %cst_107 = arith.constant dense<0.000000e+00> : vector<16xf32>
    %316 = vector.multi_reduction <add>, %315, %cst_107 [1] : vector<16x4xf32> to vector<16xf32>
    %317 = vector.shape_cast %316 : vector<16xf32> to vector<16x1xf32>
    %318 = vector.broadcast %317 : vector<16x1xf32> to vector<16x4xf32>
    %319 = arith.divf %315, %318 : vector<16x4xf32>
    %c688 = arith.constant 688 : index
    %c0_108 = arith.constant 0 : index
    %320 = vector.load %arg3[%c688, %c0_108] : memref<744x128xf32, #tpu.memory_space<vmem>>, vector<32x9xf32>
    %cst_109 = arith.constant dense<0.000000e+00> : vector<16x9xf32>
    %321 = tpu.matmul %297, %320, %cst_109 {dimension_numbers = #tpu.dot_dimension_numbers<[1], [0], [0], [1], [0, 0, 1, 1], [], []>} : vector<16x32xf32>, vector<32x9xf32>, vector<16x9xf32> -> vector<16x9xf32>
    %c736 = arith.constant 736 : index
    %c0_110 = arith.constant 0 : index
    %322 = vector.load %arg3[%c736, %c0_110] : memref<744x128xf32, #tpu.memory_space<vmem>>, vector<1x9xf32>
    %323 = vector.broadcast %322 : vector<1x9xf32> to vector<16x9xf32>
    %324 = arith.addf %321, %323 : vector<16x9xf32>
    %cst_111 = arith.constant dense<0xFF800000> : vector<16xf32>
    %325 = vector.multi_reduction <maximumf>, %324, %cst_111 [1] : vector<16x9xf32> to vector<16xf32>
    %cst_112 = arith.constant 0xFF800000 : f32
    %326 = vector.broadcast %cst_112 : f32 to vector<16xf32>
    %327 = arith.maximumf %326, %325 : vector<16xf32>
    %328 = vector.shape_cast %327 : vector<16xf32> to vector<16x1xf32>
    %329 = vector.broadcast %328 : vector<16x1xf32> to vector<16x9xf32>
    %330 = arith.subf %324, %329 : vector<16x9xf32>
    %331 = math.exp %330 : vector<16x9xf32>
    %cst_113 = arith.constant dense<0.000000e+00> : vector<16xf32>
    %332 = vector.multi_reduction <add>, %331, %cst_113 [1] : vector<16x9xf32> to vector<16xf32>
    %333 = vector.shape_cast %332 : vector<16xf32> to vector<16x1xf32>
    %334 = vector.broadcast %333 : vector<16x1xf32> to vector<16x9xf32>
    %335 = arith.divf %331, %334 : vector<16x9xf32>
    %cst_114 = arith.constant 0.000000e+00 : f32
    %336 = vector.broadcast %cst_114 : f32 to vector<16x7xf32>
    %cst_115 = arith.constant 0.000000e+00 : f32
    %337 = vector.broadcast %cst_115 : f32 to vector<16x7xf32>
    %cst_116 = arith.constant 0.000000e+00 : f32
    %338 = vector.broadcast %cst_116 : f32 to vector<16x12xf32>
    %cst_117 = arith.constant 0.000000e+00 : f32
    %339 = vector.broadcast %cst_117 : f32 to vector<16x76xf32>
    %340 = tpu.concatenate %324, %336, %335, %337, %308, %338, %319, %339 in 1 : vector<16x9xf32>, vector<16x7xf32>, vector<16x9xf32>, vector<16x7xf32>, vector<16x4xf32>, vector<16x12xf32>, vector<16x4xf32>, vector<16x76xf32> -> vector<16x128xf32>
    %c0_118 = arith.constant 0 : index
    %c0_119 = arith.constant 0 : index
    %341 = vector.load %arg4[%c0_118, %c0_119] : memref<16x128xf32, #tpu.memory_space<vmem>>, vector<16x128xf32>
    tpu.vector_store %arg4[%c0_118, %c0_119], %340 {strides = array<i32>} : memref<16x128xf32, #tpu.memory_space<vmem>>, vector<16x128xf32>,
    return
  }
  func.func @transform_0(%arg0: i32) -> (i32, i32) {
    %c0_i32 = arith.constant 0 : i32
    %c0_i32_0 = arith.constant 0 : i32
    %c0_i32_1 = arith.constant 0 : i32
    return %c0_i32, %c0_i32_0 : i32, i32
  }
  func.func @transform_1(%arg0: i32) -> (i32, i32, i32) {
    %c0_i32 = arith.constant 0 : i32
    %c0_i32_0 = arith.constant 0 : i32
    %c0_i32_1 = arith.constant 0 : i32
    %c0_i32_2 = arith.constant 0 : i32
    return %c0_i32, %c0_i32_0, %c0_i32_1 : i32, i32, i32
  }
  func.func @transform_2(%arg0: i32) -> (i32, i32) {
    %c0_i32 = arith.constant 0 : i32
    %c0_i32_0 = arith.constant 0 : i32
    %c0_i32_1 = arith.constant 0 : i32
    return %c0_i32, %c0_i32_0 : i32, i32
  }
  func.func @transform_3(%arg0: i32) -> (i32, i32) {
    %c0_i32 = arith.constant 0 : i32
    %c0_i32_0 = arith.constant 0 : i32
    %c0_i32_1 = arith.constant 0 : i32
    return %c0_i32, %c0_i32_0 : i32, i32
  }
}

</mosaic_0001>

<bundles_post_ra>
// kernel: tpu_custom_call.1
= control target key start
LH: loop header
LB: loop body
LE: loop exit
PB: predicated region body
PF: predicated region fallthrough
CT: control target
= control target key end

     0   :  { %8 = vsyncpa [#allocation3], 0  ;;  %s2329_s0 = inlined_call_operand.hbm [shape: f32[16,32], index: 0, kind: input, shape index: {}]   ;;  %s2330_s1 = inlined_call_operand.hbm [shape: f32[4,1,8], index: 1, kind: input, shape index: {}]   ;;  %s2331_s2 = inlined_call_operand.hbm [shape: f32[744,128], index: 2, kind: input, shape index: {}]   ;;  %s2332_s3 = inlined_call_operand.hbm [shape: f32[16,128], index: 3, kind: output, shape index: {}]  }
   0x1   :  { %9 = vsyncpa [#allocation6], 0  ;;  %s28_s14 = sshll.u32 %s2330_s1, 4  ;;  %s29_s14 = int_to_ptr.hbm [resolvable:$true] %s28_s14 }
   0x2   :  { %10 = vsyncpa [#allocation4], 0  ;;  %s2035_s15 = smov [#allocation5]   ;;  %s15_s19 = sshll.u32 %s2329_s0, 4  ;;  %s16_s19 = int_to_ptr.hbm [resolvable:$true] %s15_s19 }
   0x3   :  { %s30_s16 = sshll.u32 %s2035_s15, 4  ;;  %s2036_s20 = smov 16   ;;  %s31_s16 = int_to_ptr.vmem [resolvable:$true] %s30_s16 }
   0x4   :  { %s2037_s21 = smov 1   ;;  %s2038_s22 = smov [#allocation2]  }
   0x5   :  { %36 = dma.hbm_to_vmem [thread:$0]  %s29_s14, 64, %s31_s16, [#allocation6], %s2036_s20, %s2036_s20, %s2037_s21  }
   0x6   :  { %s17_s23 = sshll.u32 %s2038_s22, 4  ;;  %s2039_s24 = smov 128   ;;  %s18_s23 = int_to_ptr.vmem [resolvable:$true] %s17_s23 }
   0x7   :  { %s2040_s1 = smov 8   ;;  %s41_s27 = sshll.u32 %s2331_s2, 4  ;;  %s42_s27 = int_to_ptr.hbm [resolvable:$true] %s41_s27 }
   0x8   :  { %23 = dma.hbm_to_vmem [thread:$0]  %s16_s19, 256, %s18_s23, [#allocation3], %s2039_s24, %s2039_s24, %s2040_s1  }
   0x9   :  { %s2041_s0 = smov [#allocation7]  }
   0xa   :  { %s43_s28 = sshll.u32 %s2041_s0, 4  ;;  %s44_s28 = int_to_ptr.vmem [resolvable:$true] %s43_s28 }
   0xb   :  { %49 = dma.hbm_to_vmem [thread:$0]  %s42_s27, 11904, %s44_s28, [#allocation6], %s2039_s24, %s2039_s24, %s2040_s1  }
   0xc   :  { %2029 = dma.done.wait [#allocation3], 256  }
   0xd   :  { %2030 = vsyncadd [#allocation3], 4294967040 }
   0xe   :  { %2031 = dma.done.wait [#allocation6], 11968  }
   0xf   :  { %2032 = vsyncadd [#allocation6], 4294955328  ;;  %vm70_vm0 = vcmask 261120   ;;  %v66_v0 = vld [vmem:[#allocation2] sm:$0xff]  ;;  %v67_v1 = vld [vmem:[#allocation2 + $0x8] sm:$0xff]  ;;  %v2042_v4 = vmov 32.0  }
  0x10   :  { %v71_v2 = vsel %vm70_vm0, %v66_v0, 0.0  ;;  %v74_v3 = vsel %vm70_vm0, %v67_v1, 0.0  ;;  %1851 = vrcp.f32 %v2042_v4  ;;  %v131_v21 = vld [vmem:[#allocation7 + $0x28] sm:$0xff]  ;;  %v130_v24 = vld [vmem:[#allocation7 + $0x20] sm:$0xff]  ;;  %v129_v27 = vld [vmem:[#allocation7 + $0x18] sm:$0xff]  ;;  %vm241_vm8 = vcmask 130048  }
  0x11   :  { %72 = vadd.xlane.f32.xlu0 %v71_v2  ;;  %v166_v22 = vld [vmem:[#allocation7 + $0x48] sm:$0xff]  ;;  %152 = vmatpush.msra.mxu0 %v131_v21  ;;  %v165_v25 = vld [vmem:[#allocation7 + $0x40] sm:$0xff]  ;;  %v164_v28 = vld [vmem:[#allocation7 + $0x38] sm:$0xff]  ;;  %s2043_s2 = smov 112   ;;  %vm358_vm9 = vcmask 64512   ;;  %s2044_s29 = smov 32  }
  0x12   :  { %v195_v23 = vld [vmem:[#allocation7 + $0x68] sm:$0xff]  ;;  %181 = vmatpush.msra.mxu1 %v166_v22  ;;  %v194_v26 = vld [vmem:[#allocation7 + $0x60] sm:$0xff]  ;;  %v193_v29 = vld [vmem:[#allocation7 + $0x58] sm:$0xff]  ;;  %s2045_s30 = smov 48   ;;  %s2046_s4 = smov [#allocation8]  }
  0x13   :  { %210 = vmatpush.msra.mxu2 %v195_v23  ;;  %153 = vmatpush.msra.mxu0 %v130_v24  ;;  %v128_v30 = vld [vmem:[#allocation7 + $0x10] sm:$0xff]  ;;  %v1822_v47 = vld [vmem:[#allocation7] ss:$0 sm:$0xff]  ;;  %v1823_v51 = vld [vmem:[#allocation7 + $0x8] ss:$0 sm:$0xff]  ;;  %s1736_s5 = sshll.u32 %s2046_s4, 4  ;;  %s1737_s5 = int_to_ptr.vmem [resolvable:$true] %s1736_s5 }
  0x14   :  { %182 = vmatpush.msra.mxu1 %v165_v25  ;;  %v163_v31 = vld [vmem:[#allocation7 + $0x30] sm:$0xff]  ;;  %v1825_v61 = vld [vmem:[#allocation7 + $0xf8] ss:$0 sm:$0xff]  ;;  %v2131_v22 = vld [vmem:[#allocation5 + $0x1] ss:$0 sm:$0xff]  ;;  %s1738_s8 = sshll.u32 %s2332_s3, 4  ;;  %s1739_s8 = int_to_ptr.hbm [resolvable:$true] %s1738_s8 }
  0x15   :  { %211 = vmatpush.msra.mxu2 %v194_v26  ;;  %154 = vmatpush.msra.mxu0 %v129_v27  ;;  %v192_v32 = vld [vmem:[#allocation7 + $0x50] sm:$0xff]  ;;  %v2136_v27 = vld [vmem:[#allocation5 + $0x2] ss:$0 sm:$0xff] }
  0x16   :  { %v1852_v5 = vpop.eup %1851  ;;  %183 = vmatpush.msra.mxu1 %v164_v28  ;;  %v1824_v62 = vld [vmem:[#allocation7 + $0xf0] ss:$0 sm:$0xff] }
  0x17   :  { %v78_v6 = vmul.f32 32.0, %v1852_v5  ;;  %vm82_vm1 = vweird.f32 %v1852_v5  ;;  %212 = vmatpush.msra.mxu2 %v193_v29  ;;  %155 = vmatpush.msra.mxu0 %v128_v30 }
  0x18   :  { %184 = vmatpush.msra.mxu1 %v163_v31 }
  0x19   :  { %75 = vadd.xlane.f32.xlu0 %v74_v3  ;;  %v79_v7 = vsub.f32 1.0, %v78_v6  ;;  %213 = vmatpush.msra.mxu2 %v192_v32  ;;  %v1826_v3 = vld [vmem:[#allocation7 + $0x100] ss:$0 sm:$0xff]  ;;  %v2140_v32 = vld [vmem:[#allocation5 + $0x3] ss:$0 sm:$0xff] }
  0x1b   :  { %v80_v8 = vmul.f32 %v1852_v5, %v79_v7 }
  0x1d   :  { %v81_v9 = vadd.f32 %v1852_v5, %v80_v8 }
  0x1f   :  { %v2086_v10 = vsel %vm82_vm1, %v1852_v5, %v81_v9 }
  0x84   :  { %v73_v11 = vpop.xlane.xlu0 %72 }
  0x85   :  { %v84_v12 = vmul.f32 %v2086_v10, %v73_v11 }
  0x87   :  { %v86_v13 = vsub.f32 %v66_v0, %v84_v12 }
  0x89   :  { %v88_v14 = vmul.f32 %v86_v13, %v86_v13 }
  0x8b   :  { %v90_v15 = vsel %vm70_vm0, %v88_v14, 0.0 }
  0x8c   :  { %91 = vadd.xlane.f32.xlu1 %v90_v15  ;;  %v76_v16 = vpop.xlane.xlu0 %75 }
  0x8d   :  { %v85_v17 = vmul.f32 %v2086_v10, %v76_v16 }
  0x8f   :  { %v2091_v18 = vsub.f32 %v67_v1, %v85_v17  ;;  %v2127_v17 = vld [vmem:[#allocation5] ss:$0 sm:$0xff] }
  0x91   :  { %v89_v19 = vmul.f32 %v2091_v18, %v2091_v18 }
  0x93   :  { %v93_v20 = vsel %vm70_vm0, %v89_v19, 0.0 }
  0x94   :  { %94 = vadd.xlane.f32.xlu1 %v93_v20 }
  0xff   :  { %v92_v33 = vpop.xlane.xlu1 %91 }
 0x100   :  { %v96_v34 = vmul.f32 %v92_v33, %v2086_v10 }
 0x102   :  { %v98_v35 = vadd.f32 1e-05, %v96_v34 }
 0x104   :  { %1853 = vrsqrt.f32 %v98_v35  ;;  %vm106_vm3 = vweird.f32 %v98_v35 }
 0x107   :  { %v95_v36 = vpop.xlane.xlu1 %94 }
 0x108   :  { %v97_v37 = vmul.f32 %v95_v36, %v2086_v10 }
 0x10a   :  { %v1854_v38 = vpop.eup %1853  ;;  %v99_v39 = vadd.f32 1e-05, %v97_v37 }
 0x10b   :  { %v101_v40 = vmul.f32 %v1854_v38, %v98_v35  ;;  %vm107_vm2 = vweird.f32 %v1854_v38 }
 0x10c   :  { %1855 = vrsqrt.f32 %v99_v39  ;;  %vm108_vm4 = vmor %vm106_vm3, %vm107_vm2  ;;  %vm116_vm6 = vweird.f32 %v99_v39 }
 0x10d   :  { %v102_v41 = vmul.f32 %v1854_v38, %v101_v40 }
 0x10f   :  { %v103_v42 = vmul.f32 0.5, %v102_v41 }
 0x111   :  { %v104_v43 = vsub.f32 1.5, %v103_v42 }
 0x112   :  { %v1856_v44 = vpop.eup %1855 }
 0x113   :  { %v105_v45 = vmul.f32 %v1854_v38, %v104_v43  ;;  %v111_v46 = vmul.f32 %v1856_v44, %v99_v39  ;;  %vm117_vm5 = vweird.f32 %v1856_v44 }
 0x114   :  { %vm118_vm7 = vmor %vm116_vm6, %vm117_vm5 }
 0x115   :  { %v109_v48 = vsel %vm108_vm4, %v1854_v38, %v105_v45  ;;  %v112_v49 = vmul.f32 %v1856_v44, %v111_v46 }
 0x116   :  { %v120_v50 = vmul.f32 %v109_v48, %v86_v13 }
 0x117   :  { %v113_v52 = vmul.f32 0.5, %v112_v49 }
 0x118   :  { %v123_v53 = vmul.f32 %v1822_v47, %v120_v50 }
 0x119   :  { %v114_v54 = vsub.f32 1.5, %v113_v52 }
 0x11a   :  { %v2098_v55 = vadd.f32 %v1823_v51, %v123_v53 }
 0x11b   :  { %v115_v56 = vmul.f32 %v1856_v44, %v114_v54 }
 0x11c   :  { %1752 = vmatmul.msk.f32.vlgmr.msra.gmra.mxu0 %vm70_vm0, %v2098_v55  ;;  %1754 = vmatmul.msk.f32.vlgmr.msra.gmra.mxu1 %vm70_vm0, %v2098_v55 }
 0x11d   :  { %v119_v57 = vsel %vm118_vm7, %v1856_v44, %v115_v56  ;;  %1756 = vmatmul.msk.f32.vlgmr.msra.gmra.mxu2 %vm70_vm0, %v2098_v55 }
 0x11e   :  { %v121_v58 = vmul.f32 %v119_v57, %v2091_v18 }
 0x120   :  { %v124_v59 = vmul.f32 %v1822_v47, %v121_v58 }
 0x122   :  { %v2107_v60 = vadd.f32 %v1823_v51, %v124_v59 }
 0x124   :  { %1753 = vmatmul.msk.f32.gmra.mxu0 %vm70_vm0, %v2107_v60  ;;  %1755 = vmatmul.msk.f32.gmra.mxu1 %vm70_vm0, %v2107_v60 }
 0x125   :  { %1757 = vmatmul.msk.f32.gmra.mxu2 %vm70_vm0, %v2107_v60 }
 0x199   :  { %v157_v63 = vpop.f32.mrf.mxu0  ;;  %v186_v0 = vpop.f32.mrf.mxu1 }
 0x19a   :  { %v187_v1 = vadd.f32 %v1825_v61, %v186_v0  ;;  %v158_v2 = vadd.f32 %v1824_v62, %v157_v63 }
 0x19c   :  { %229 = vrot.lane.b32.xlu2 %v187_v1, %s2043_s2  ;;  %1758 = vmatpush.xpose.msk.msra.mxu3 %vm241_vm8, %v187_v1 }
 0x19f   :  { %1759 = vmatmul.msk.f32.vlgmr.msra.gmra.mxu3 %vm241_vm8, %v158_v2 }
 0x1a0   :  { %v215_v4 = vpop.f32.mrf.mxu2 }
 0x1a1   :  { %v216_v5 = vadd.f32 %v1826_v3, %v215_v4  ;;  %v160_v6 = vpop.f32.mrf.mxu0  ;;  %v189_v7 = vpop.f32.mrf.mxu1 }
 0x1a2   :  { %v161_v8 = vadd.f32 %v1824_v62, %v160_v6  ;;  %v190_v9 = vadd.f32 %v1825_v61, %v189_v7 }
 0x1a3   :  { %473 = vmatpush.msrb.mxu1 %v216_v5 }
 0x1a4   :  { %223 = vrot.lane.b32.xlu2 %v158_v2, %s2043_s2  ;;  %231 = vrot.lane.b32.xlu0 %v190_v9, %s2043_s2 }
 0x1a5   :  { %1760 = vmatpush.xpose.msk.msrb.mxu3 %vm241_vm8, %v190_v9  ;;  %225 = vrot.lane.b32.xlu1 %v161_v8, %s2043_s2 }
 0x1a8   :  { %v218_v11 = vpop.f32.mrf.mxu2  ;;  %1761 = vmatmul.msk.f32.vlgmr.msrb.gmra.mxu3 %vm241_vm8, %v161_v8 }
 0x1a9   :  { %v219_v12 = vadd.f32 %v1826_v3, %v218_v11 }
 0x1ab   :  { %496 = vmatpush.msrb.mxu2 %v219_v12 }
 0x1f6   :  { %v230_v13 = vpop.permute.xlu2 %229 }
 0x1f7   :  { %1762 = vmatpush.xpose.msk.msra.mxu3 %vm241_vm8, %v230_v13 }
 0x1fe   :  { %v224_v14 = vpop.permute.xlu2 %223 }
 0x1ff   :  { %1763 = vmatmul.msk.f32.vlgmr.msra.gmra.mxu3 %vm241_vm8, %v224_v14 }
 0x216   :  { %v232_v15 = vpop.permute.xlu0 %231 }
 0x217   :  { %1764 = vmatpush.xpose.msk.msrb.mxu0 %vm241_vm8, %v232_v15  ;;  %v226_v16 = vpop.permute.xlu1 %225 }
 0x21a   :  { %1765 = vmatmul.msk.f32.vlgmr.msrb.gmra.mxu0 %vm241_vm8, %v226_v16 }
 0x222   :  { %v263_v18 = vpop.f32.mrf.mxu3 }
 0x223   :  { %v338_v19 = vmul.f32 0.25, %v263_v18 }
 0x225   :  { %v354_v20 = vadd.f32 %v2127_v17, %v338_v19 }
 0x227   :  { %v359_v21 = vsel %vm358_vm9, %v354_v20, -inf }
 0x228   :  { %360 = vmax.xlane.f32.xlu0 %v359_v21 }
 0x22b   :  { %v287_v23 = vpop.f32.mrf.mxu3 }
 0x22c   :  { %v339_v24 = vmul.f32 0.25, %v287_v23 }
 0x22e   :  { %v355_v25 = vadd.f32 %v2131_v22, %v339_v24 }
 0x230   :  { %v362_v26 = vsel %vm358_vm9, %v355_v25, -inf }
 0x231   :  { %363 = vmax.xlane.f32.xlu1 %v362_v26 }
 0x24a   :  { %235 = vrot.lane.b32.xlu1 %v216_v5, %s2043_s2 }
 0x282   :  { %v311_v28 = vpop.f32.mrf.mxu3 }
 0x283   :  { %v340_v29 = vmul.f32 0.25, %v311_v28 }
 0x285   :  { %v356_v30 = vadd.f32 %v2136_v27, %v340_v29 }
 0x287   :  { %v365_v31 = vsel %vm358_vm9, %v356_v30, -inf }
 0x288   :  { %366 = vmax.xlane.f32.xlu2 %v365_v31 }
 0x297   :  { %v335_v33 = vpop.f32.mrf.mxu0 }
 0x298   :  { %v341_v34 = vmul.f32 0.25, %v335_v33 }
 0x29a   :  { %v357_v35 = vadd.f32 %v2140_v32, %v341_v34 }
 0x29b   :  { %v361_v43 = vpop.xlane.xlu0 %360 }
 0x29c   :  { %v368_v36 = vsel %vm358_vm9, %v357_v35, -inf  ;;  %v371_v46 = vsub.f32 %v354_v20, %v361_v43  ;;  %v583_v43 = vld [vmem:[#allocation7 + $0x88] sm:$0xff] }
 0x29d   :  { %369 = vmax.xlane.f32.xlu2 %v368_v36  ;;  %604 = vmatpush.msra.mxu2 %v583_v43 }
 0x29e   :  { %v375_v48 = vmul.f32 1.442695, %v371_v46 }
 0x2a4   :  { %v364_v37 = vpop.xlane.xlu1 %363 }
 0x2a5   :  { %v372_v38 = vsub.f32 %v355_v25, %v364_v37 }
 0x2a7   :  { %v377_v39 = vmul.f32 1.442695, %v372_v38 }
 0x2a9   :  { %1857 = vpow2.f32 %v377_v39 }
 0x2af   :  { %v1858_v40 = vpop.eup %1857 }
 0x2b0   :  { %v386_v41 = vsel %vm358_vm9, %v1858_v40, 0.0 }
 0x2b1   :  { %387 = vadd.xlane.f32.xlu0 %v386_v41 }
 0x2bc   :  { %v236_v42 = vpop.permute.xlu1 %235 }
 0x2bd   :  { %519 = vmatpush.msrb.mxu3 %v236_v42 }
 0x2c5   :  { %237 = vrot.lane.b32.xlu0 %v219_v12, %s2043_s2 }
 0x2fb   :  { %v367_v44 = vpop.xlane.xlu2 %366 }
 0x2fc   :  { %v373_v45 = vsub.f32 %v356_v30, %v367_v44 }
 0x2fe   :  { %v379_v47 = vmul.f32 1.442695, %v373_v45 }
 0x300   :  { %1859 = vpow2.f32 %v379_v47 }
 0x301   :  { %1861 = vpow2.f32 %v375_v48 }
 0x306   :  { %v1860_v49 = vpop.eup %1859 }
 0x307   :  { %v389_v50 = vsel %vm358_vm9, %v1860_v49, 0.0  ;;  %v2147_v51 = vpop.eup %1861 }
 0x308   :  { %390 = vadd.xlane.f32.xlu2 %v389_v50  ;;  %v383_v52 = vsel %vm358_vm9, %v2147_v51, 0.0 }
 0x310   :  { %v370_v53 = vpop.xlane.xlu2 %369  ;;  %384 = vadd.xlane.f32.xlu2 %v383_v52  ;;  %v582_v52 = vld [vmem:[#allocation7 + $0x80] sm:$0xff] }
 0x311   :  { %v374_v54 = vsub.f32 %v357_v35, %v370_v53  ;;  %605 = vmatpush.msra.mxu2 %v582_v52  ;;  %v548_v53 = vld [vmem:[#allocation7 + $0x70] sm:$0xff] }
 0x313   :  { %v381_v56 = vmul.f32 1.442695, %v374_v54 }
 0x315   :  { %1863 = vpow2.f32 %v381_v56 }
 0x31b   :  { %v2151_v57 = vpop.eup %1863 }
 0x31c   :  { %v392_v58 = vsel %vm358_vm9, %v2151_v57, 0.0 }
 0x31d   :  { %393 = vadd.xlane.f32.xlu2 %v392_v58 }
 0x324   :  { %v388_v59 = vpop.xlane.xlu0 %387 }
 0x325   :  { %1865 = vrcp.f32 %v388_v59  ;;  %v421_v0 = vand.u32 2147483648, %v388_v59  ;;  %v419_v2 = vand.u32 2147483647, %v388_v59  ;;  %vm415_vm11 = vweird.f32 %v388_v59 }
 0x327   :  { %v422_v4 = vor.u32 1.1754944e-38, %v421_v0  ;;  %vm420_vm13 = vcmp.eq.f32.partialorder %v419_v2, 8.507059e+37 }
 0x32b   :  { %v1866_v61 = vpop.eup %1865 }
 0x32c   :  { %v411_v62 = vmul.f32 %v1866_v61, %v388_v59  ;;  %vm416_vm10 = vweird.f32 %v1866_v61 }
 0x32d   :  { %vm417_vm12 = vmor %vm415_vm11, %vm416_vm10 }
 0x32e   :  { %v412_v63 = vsub.f32 1.0, %v411_v62 }
 0x330   :  { %v413_v1 = vmul.f32 %v1866_v61, %v412_v63 }
 0x332   :  { %v414_v3 = vadd.f32 %v1866_v61, %v413_v1 }
 0x334   :  { %v418_v5 = vsel %vm417_vm12, %v1866_v61, %v414_v3 }
 0x335   :  { %v423_v6 = vsel %vm420_vm13, %v422_v4, %v418_v5 }
 0x336   :  { %v424_v7 = vmul.f32 %v1858_v40, %v423_v6 }
 0x337   :  { %v238_v8 = vpop.permute.xlu0 %237 }
 0x338   :  { %1767 = vmatmul.msk.f32.vlgmr.msrb.gmra.mxu2 %vm358_vm9, %v424_v7  ;;  %542 = vmatpush.msra.mxu0 %v238_v8 }
 0x37b   :  { %v391_v9 = vpop.xlane.xlu2 %390 }
 0x37c   :  { %1867 = vrcp.f32 %v391_v9  ;;  %v436_v15 = vand.u32 2147483648, %v391_v9  ;;  %v434_v18 = vand.u32 2147483647, %v391_v9  ;;  %vm430_vm15 = vweird.f32 %v391_v9 }
 0x37e   :  { %v437_v21 = vor.u32 1.1754944e-38, %v436_v15  ;;  %vm435_vm2 = vcmp.eq.f32.partialorder %v434_v18, 8.507059e+37 }
 0x382   :  { %v1868_v11 = vpop.eup %1867 }
 0x383   :  { %v426_v12 = vmul.f32 %v1868_v11, %v391_v9  ;;  %v385_v13 = vpop.xlane.xlu2 %384  ;;  %vm431_vm14 = vweird.f32 %v1868_v11 }
 0x384   :  { %1869 = vrcp.f32 %v385_v13  ;;  %vm432_vm1 = vmor %vm430_vm15, %vm431_vm14  ;;  %v406_v29 = vand.u32 2147483648, %v385_v13  ;;  %v404_v31 = vand.u32 2147483647, %v385_v13  ;;  %vm400_vm4 = vweird.f32 %v385_v13 }
 0x385   :  { %v427_v14 = vsub.f32 1.0, %v426_v12 }
 0x386   :  { %v407_v35 = vor.u32 1.1754944e-38, %v406_v29  ;;  %vm405_vm6 = vcmp.eq.f32.partialorder %v404_v31, 8.507059e+37 }
 0x387   :  { %v428_v16 = vmul.f32 %v1868_v11, %v427_v14 }
 0x389   :  { %v429_v19 = vadd.f32 %v1868_v11, %v428_v16 }
 0x38a   :  { %v1870_v20 = vpop.eup %1869 }
 0x38b   :  { %v433_v23 = vsel %vm432_vm1, %v1868_v11, %v429_v19  ;;  %v396_v24 = vmul.f32 %v1870_v20, %v385_v13  ;;  %vm401_vm3 = vweird.f32 %v1870_v20 }
 0x38c   :  { %v438_v25 = vsel %vm435_vm2, %v437_v21, %v433_v23  ;;  %vm402_vm5 = vmor %vm400_vm4, %vm401_vm3  ;;  %v670_v21 = vld [vmem:[#allocation7 + $0x98] sm:$0xff]  ;;  %v669_v23 = vld [vmem:[#allocation7 + $0x90] sm:$0xff]  ;;  %vm732_vm4 = vcmask 523264  }
 0x38d   :  { %v397_v26 = vsub.f32 1.0, %v396_v24  ;;  %v439_v28 = vmul.f32 %v1860_v49, %v438_v25 }
 0x38f   :  { %v398_v30 = vmul.f32 %v1870_v20, %v397_v26  ;;  %1768 = vmatmul.msk.f32.vlgmr.msrb.gmra.mxu3 %vm358_vm9, %v439_v28 }
 0x390   :  { %v394_v33 = vpop.xlane.xlu2 %393 }
 0x391   :  { %v399_v34 = vadd.f32 %v1870_v20, %v398_v30  ;;  %1871 = vrcp.f32 %v394_v33  ;;  %v451_v42 = vand.u32 2147483648, %v394_v33  ;;  %v449_v45 = vand.u32 2147483647, %v394_v33 }
 0x392   :  { %vm445_vm10 = vweird.f32 %v394_v33 }
 0x393   :  { %v403_v36 = vsel %vm402_vm5, %v1870_v20, %v399_v34  ;;  %v452_v47 = vor.u32 1.1754944e-38, %v451_v42  ;;  %vm450_vm12 = vcmp.eq.f32.partialorder %v449_v45, 8.507059e+37  ;;  %v671_v20 = vld [vmem:[#allocation7 + $0xa0] sm:$0xff] }
 0x394   :  { %v408_v37 = vsel %vm405_vm6, %v407_v35, %v403_v36 }
 0x395   :  { %v409_v38 = vmul.f32 %v2147_v51, %v408_v37  ;;  %v549_v51 = vld [vmem:[#allocation7 + $0x78] sm:$0xff] }
 0x396   :  { %570 = vmatpush.msra.mxu1 %v549_v51 }
 0x397   :  { %v1872_v39 = vpop.eup %1871  ;;  %1766 = vmatmul.msk.f32.vlgmr.msrb.gmra.mxu1 %vm358_vm9, %v409_v38  ;;  %v1832_v38 = vld [vmem:[#allocation7 + $0x110] ss:$0 sm:$0xff] }
 0x398   :  { %v441_v40 = vmul.f32 %v1872_v39, %v394_v33  ;;  %vm446_vm7 = vweird.f32 %v1872_v39  ;;  %571 = vmatpush.msra.mxu1 %v548_v53 }
 0x399   :  { %vm447_vm11 = vmor %vm445_vm10, %vm446_vm7 }
 0x39a   :  { %v442_v41 = vsub.f32 1.0, %v441_v40 }
 0x39c   :  { %v443_v44 = vmul.f32 %v1872_v39, %v442_v41  ;;  %v1833_v41 = vld [vmem:[#allocation7 + $0x118] ss:$0 sm:$0xff] }
 0x39e   :  { %v444_v46 = vadd.f32 %v1872_v39, %v443_v44 }
 0x3a0   :  { %v448_v48 = vsel %vm447_vm11, %v1872_v39, %v444_v46 }
 0x3a1   :  { %v453_v49 = vsel %vm450_vm12, %v452_v47, %v448_v48 }
 0x3a2   :  { %v454_v50 = vmul.f32 %v2151_v57, %v453_v49  ;;  %v1831_v57 = vld [vmem:[#allocation7 + $0x108] ss:$0 sm:$0xff] }
 0x3a4   :  { %1769 = vmatmul.msk.f32.vlgmr.msra.gmra.mxu0 %vm358_vm9, %v454_v50 }
 0x3bb   :  { %v498_v58 = vpop.f32.mrf.mxu2 }
 0x412   :  { %v521_v54 = vpop.f32.mrf.mxu3 }
 0x413   :  { %1772 = vmatmul.msk.f32.vlgmr.msra.gmra.mxu2 %vm241_vm8, %v521_v54  ;;  %v729_v54 = vld [vmem:[#allocation7 + $0xe8] sm:$0xff] }
 0x414   :  { %v475_v56 = vpop.f32.mrf.mxu1  ;;  %747 = vmatpush.msrb.mxu0 %v729_v54  ;;  %v816_v54 = vld [vmem:[#allocation7 + $0x140] sm:$0xff] }
 0x415   :  { %1770 = vmatmul.msk.f32.vlgmr.msra.gmra.mxu1 %vm241_vm8, %v475_v56  ;;  %v728_v56 = vld [vmem:[#allocation7 + $0xe0] sm:$0xff] }
 0x416   :  { %748 = vmatpush.msrb.mxu0 %v728_v56  ;;  %v851_v56 = vld [vmem:[#allocation7 + $0x160] sm:$0xff] }
 0x41d   :  { %1771 = vmatmul.msk.f32.gmra.mxu1 %vm241_vm8, %v498_v58  ;;  %v727_v58 = vld [vmem:[#allocation7 + $0xd8] sm:$0xff] }
 0x41e   :  { %749 = vmatpush.msrb.mxu0 %v727_v58  ;;  %v880_v58 = vld [vmem:[#allocation7 + $0x180] sm:$0xff] }
 0x421   :  { %v544_v59 = vpop.f32.mrf.mxu0 }
 0x422   :  { %1773 = vmatmul.msk.f32.gmra.mxu2 %vm241_vm8, %v544_v59  ;;  %v726_v59 = vld [vmem:[#allocation7 + $0xd0] sm:$0xff] }
 0x423   :  { %750 = vmatpush.msrb.mxu0 %v726_v59 }
 0x492   :  { %v573_v61 = vpop.f32.mrf.mxu1 }
 0x493   :  { %v580_v62 = vadd.f32 %v1831_v57, %v573_v61  ;;  %v724_v61 = vld [vmem:[#allocation7 + $0xc0] sm:$0xff] }
 0x496   :  { %v607_v63 = vpop.f32.mrf.mxu2 }
 0x497   :  { %v613_v0 = vadd.f32 %v607_v63, %v580_v62  ;;  %v723_v62 = vld [vmem:[#allocation7 + $0xb8] sm:$0xff]  ;;  %v722_v63 = vld [vmem:[#allocation7 + $0xb0] sm:$0xff] }
 0x499   :  { %v615_v1 = vadd.f32 %v613_v0, %v2098_v55  ;;  %v1834_v0 = vld [vmem:[#allocation7 + $0x120] ss:$0 sm:$0xff] }
 0x49a   :  { %v576_v3 = vpop.f32.mrf.mxu1 }
 0x49b   :  { %v619_v2 = vsel %vm70_vm0, %v615_v1, 0.0  ;;  %v581_v4 = vadd.f32 %v1831_v57, %v576_v3  ;;  %v725_v57 = vld [vmem:[#allocation7 + $0xc8] sm:$0xff] }
 0x49c   :  { %620 = vadd.xlane.f32.xlu2 %v619_v2  ;;  %751 = vmatpush.msrb.mxu0 %v725_v57 }
 0x49e   :  { %752 = vmatpush.msrb.mxu0 %v724_v61 }
 0x4a0   :  { %753 = vmatpush.msrb.mxu0 %v723_v62 }
 0x4a2   :  { %754 = vmatpush.msrb.mxu0 %v722_v63 }
 0x4a5   :  { %v610_v5 = vpop.f32.mrf.mxu2 }
 0x4a6   :  { %v614_v6 = vadd.f32 %v610_v5, %v581_v4 }
 0x4a8   :  { %v616_v7 = vadd.f32 %v614_v6, %v2107_v60  ;;  %v672_v60 = vld [vmem:[#allocation7 + $0xa8] sm:$0xff] }
 0x4a9   :  { %693 = vmatpush.msra.mxu3 %v672_v60 }
 0x4aa   :  { %v622_v8 = vsel %vm70_vm0, %v616_v7, 0.0 }
 0x4ab   :  { %623 = vadd.xlane.f32.xlu2 %v622_v8  ;;  %694 = vmatpush.msra.mxu3 %v671_v20 }
 0x4ad   :  { %695 = vmatpush.msra.mxu3 %v670_v21 }
 0x4af   :  { %696 = vmatpush.msra.mxu3 %v669_v23 }
 0x50f   :  { %v621_v9 = vpop.xlane.xlu2 %620 }
 0x510   :  { %v625_v11 = vmul.f32 %v621_v9, %v2086_v10 }
 0x512   :  { %v627_v12 = vsub.f32 %v615_v1, %v625_v11 }
 0x514   :  { %v629_v13 = vmul.f32 %v627_v12, %v627_v12 }
 0x516   :  { %v631_v14 = vsel %vm70_vm0, %v629_v13, 0.0 }
 0x517   :  { %632 = vadd.xlane.f32.xlu2 %v631_v14 }
 0x51e   :  { %v624_v55 = vpop.xlane.xlu2 %623 }
 0x51f   :  { %v626_v15 = vmul.f32 %v624_v55, %v2086_v10 }
 0x521   :  { %v628_v16 = vsub.f32 %v616_v7, %v626_v15 }
 0x523   :  { %v630_v18 = vmul.f32 %v628_v16, %v628_v16 }
 0x525   :  { %v634_v19 = vsel %vm70_vm0, %v630_v18, 0.0 }
 0x526   :  { %635 = vadd.xlane.f32.xlu0 %v634_v19 }
 0x58a   :  { %v633_v24 = vpop.xlane.xlu2 %632 }
 0x58b   :  { %v637_v25 = vmul.f32 %v633_v24, %v2086_v10  ;;  %v1835_v24 = vld [vmem:[#allocation7 + $0x128] ss:$0 sm:$0xff] }
 0x58d   :  { %v639_v26 = vadd.f32 1e-05, %v637_v25 }
 0x58f   :  { %1873 = vrsqrt.f32 %v639_v26  ;;  %vm647_vm14 = vweird.f32 %v639_v26 }
 0x595   :  { %v1874_v28 = vpop.eup %1873 }
 0x596   :  { %v642_v29 = vmul.f32 %v1874_v28, %v639_v26  ;;  %vm648_vm13 = vweird.f32 %v1874_v28 }
 0x597   :  { %vm649_vm15 = vmor %vm647_vm14, %vm648_vm13 }
 0x598   :  { %v643_v30 = vmul.f32 %v1874_v28, %v642_v29 }
 0x599   :  { %v636_v31 = vpop.xlane.xlu0 %635 }
 0x59a   :  { %v644_v33 = vmul.f32 0.5, %v643_v30  ;;  %v638_v34 = vmul.f32 %v636_v31, %v2086_v10 }
 0x59c   :  { %v645_v35 = vsub.f32 1.5, %v644_v33  ;;  %v640_v36 = vadd.f32 1e-05, %v638_v34 }
 0x59e   :  { %v646_v37 = vmul.f32 %v1874_v28, %v645_v35  ;;  %1875 = vrsqrt.f32 %v640_v36  ;;  %vm657_vm2 = vweird.f32 %v640_v36 }
 0x5a0   :  { %v650_v39 = vsel %vm649_vm15, %v1874_v28, %v646_v37 }
 0x5a1   :  { %v661_v40 = vmul.f32 %v650_v39, %v627_v12 }
 0x5a3   :  { %v664_v42 = vmul.f32 %v1832_v38, %v661_v40 }
 0x5a4   :  { %v1876_v43 = vpop.eup %1875 }
 0x5a5   :  { %v652_v44 = vmul.f32 %v1876_v43, %v640_v36  ;;  %v667_v45 = vadd.f32 %v1833_v41, %v664_v42  ;;  %vm658_vm1 = vweird.f32 %v1876_v43 }
 0x5a6   :  { %vm659_vm3 = vmor %vm657_vm2, %vm658_vm1 }
 0x5a7   :  { %v653_v46 = vmul.f32 %v1876_v43, %v652_v44  ;;  %1774 = vmatmul.msk.f32.vlgmr.msra.gmra.mxu3 %vm70_vm0, %v667_v45 }
 0x5a9   :  { %v654_v47 = vmul.f32 0.5, %v653_v46  ;;  %v854_v46 = vld [vmem:[#allocation7 + $0x178] sm:$0xff] }
 0x5aa   :  { %869 = vmatpush.msrb.mxu2 %v854_v46 }
 0x5ab   :  { %v655_v48 = vsub.f32 1.5, %v654_v47  ;;  %v883_v47 = vld [vmem:[#allocation7 + $0x198] sm:$0xff] }
 0x5ac   :  { %898 = vmatpush.msrb.mxu3 %v883_v47 }
 0x5ad   :  { %v656_v49 = vmul.f32 %v1876_v43, %v655_v48  ;;  %v818_v48 = vld [vmem:[#allocation7 + $0x150] sm:$0xff] }
 0x5af   :  { %v660_v50 = vsel %vm659_vm3, %v1876_v43, %v656_v49  ;;  %v853_v49 = vld [vmem:[#allocation7 + $0x170] sm:$0xff] }
 0x5b0   :  { %v662_v51 = vmul.f32 %v660_v50, %v628_v16  ;;  %v882_v50 = vld [vmem:[#allocation7 + $0x190] sm:$0xff]  ;;  %870 = vmatpush.msrb.mxu2 %v853_v49 }
 0x5b1   :  { %899 = vmatpush.msrb.mxu3 %v882_v50 }
 0x5b2   :  { %v665_v52 = vmul.f32 %v1832_v38, %v662_v51  ;;  %v817_v51 = vld [vmem:[#allocation7 + $0x148] sm:$0xff] }
 0x5b4   :  { %v668_v53 = vadd.f32 %v1833_v41, %v665_v52  ;;  %v852_v52 = vld [vmem:[#allocation7 + $0x168] sm:$0xff] }
 0x5b5   :  { %871 = vmatpush.msrb.mxu2 %v852_v52 }
 0x5b6   :  { %1775 = vmatmul.msk.f32.gmra.mxu3 %vm70_vm0, %v668_v53 }
 0x5b7   :  { %872 = vmatpush.msrb.mxu2 %v851_v56 }
 0x62a   :  { %v698_v1 = vpop.f32.mrf.mxu3 }
 0x62b   :  { %v699_v2 = vadd.f32 %v1834_v0, %v698_v1 }
 0x62d   :  { %v704_v3 = vmul.f32 %v699_v2, %v699_v2 }
 0x62f   :  { %v706_v4 = vmul.f32 %v704_v3, %v699_v2 }
 0x631   :  { %v708_v5 = vmul.f32 0.044715, %v706_v4 }
 0x633   :  { %v710_v6 = vadd.f32 %v708_v5, %v699_v2 }
 0x635   :  { %v712_v7 = vmul.f32 0.7978846, %v710_v6 }
 0x637   :  { %1877 = vtanh.f32 %v712_v7  ;;  %v1836_v7 = vld [vmem:[#allocation7 + $0x130] ss:$0 sm:$0xff] }
 0x639   :  { %v701_v8 = vpop.f32.mrf.mxu3 }
 0x63a   :  { %v702_v9 = vadd.f32 %v1834_v0, %v701_v8 }
 0x63c   :  { %v705_v11 = vmul.f32 %v702_v9, %v702_v9 }
 0x63d   :  { %v1878_v12 = vpop.eup %1877 }
 0x63e   :  { %v716_v13 = vadd.f32 1.0, %v1878_v12  ;;  %v707_v14 = vmul.f32 %v705_v11, %v702_v9  ;;  %v1837_v11 = vld [vmem:[#allocation7 + $0x138] ss:$0 sm:$0xff] }
 0x640   :  { %v718_v55 = vmul.f32 0.5, %v716_v13  ;;  %v709_v15 = vmul.f32 0.044715, %v707_v14 }
 0x642   :  { %v720_v16 = vmul.f32 %v718_v55, %v699_v2  ;;  %v711_v18 = vadd.f32 %v709_v15, %v702_v9 }
 0x644   :  { %1776 = vmatmul.msk.f32.vlgmr.msrb.gmra.mxu0 %vm732_vm4, %v720_v16  ;;  %v713_v19 = vmul.f32 0.7978846, %v711_v18 }
 0x646   :  { %1879 = vtanh.f32 %v713_v19 }
 0x64c   :  { %v1880_v60 = vpop.eup %1879 }
 0x64d   :  { %v717_v20 = vadd.f32 1.0, %v1880_v60 }
 0x64f   :  { %v719_v21 = vmul.f32 0.5, %v717_v20 }
 0x651   :  { %v721_v23 = vmul.f32 %v719_v21, %v702_v9 }
 0x653   :  { %1777 = vmatmul.msk.f32.gmra.mxu0 %vm732_vm4, %v721_v23 }
 0x6c1   :  { %v756_v25 = vpop.f32.mrf.mxu0 }
 0x6c2   :  { %v757_v26 = vadd.f32 %v1835_v24, %v756_v25 }
 0x6c4   :  { %v762_v28 = vadd.f32 %v757_v26, %v667_v45  ;;  %v819_v45 = vld [vmem:[#allocation7 + $0x158] sm:$0xff] }
 0x6c5   :  { %840 = vmatpush.msrb.mxu1 %v819_v45 }
 0x6c6   :  { %v766_v29 = vsel %vm70_vm0, %v762_v28, 0.0 }
 0x6c7   :  { %767 = vadd.xlane.f32.xlu1 %v766_v29  ;;  %841 = vmatpush.msrb.mxu1 %v818_v48  ;;  %v1840_v29 = vld [vmem:[#allocation7 + $0x230] ss:$0 sm:$0xff] }
 0x6c9   :  { %842 = vmatpush.msrb.mxu1 %v817_v51 }
 0x6cb   :  { %843 = vmatpush.msrb.mxu1 %v816_v54 }
 0x6d0   :  { %v759_v30 = vpop.f32.mrf.mxu0 }
 0x6d1   :  { %v760_v31 = vadd.f32 %v1835_v24, %v759_v30  ;;  %v1838_v24 = vld [vmem:[#allocation7 + $0x220] ss:$0 sm:$0xff] }
 0x6d3   :  { %v763_v33 = vadd.f32 %v760_v31, %v668_v53  ;;  %v881_v53 = vld [vmem:[#allocation7 + $0x188] sm:$0xff] }
 0x6d4   :  { %900 = vmatpush.msrb.mxu3 %v881_v53 }
 0x6d5   :  { %v769_v34 = vsel %vm70_vm0, %v763_v33, 0.0 }
 0x6d6   :  { %770 = vadd.xlane.f32.xlu2 %v769_v34  ;;  %901 = vmatpush.msrb.mxu3 %v880_v58 }
 0x73a   :  { %v768_v35 = vpop.xlane.xlu1 %767 }
 0x73b   :  { %v772_v36 = vmul.f32 %v768_v35, %v2086_v10 }
 0x73d   :  { %v774_v37 = vsub.f32 %v762_v28, %v772_v36  ;;  %v1839_v28 = vld [vmem:[#allocation7 + $0x228] ss:$0 sm:$0xff] }
 0x73f   :  { %v776_v38 = vmul.f32 %v774_v37, %v774_v37 }
 0x741   :  { %v778_v39 = vsel %vm70_vm0, %v776_v38, 0.0 }
 0x742   :  { %779 = vadd.xlane.f32.xlu2 %v778_v39 }
 0x749   :  { %v771_v40 = vpop.xlane.xlu2 %770 }
 0x74a   :  { %v773_v41 = vmul.f32 %v771_v40, %v2086_v10 }
 0x74c   :  { %v2184_v42 = vsub.f32 %v763_v33, %v773_v41 }
 0x74e   :  { %v777_v43 = vmul.f32 %v2184_v42, %v2184_v42 }
 0x750   :  { %v781_v44 = vsel %vm70_vm0, %v777_v43, 0.0 }
 0x751   :  { %782 = vadd.xlane.f32.xlu2 %v781_v44 }
 0x7b5   :  { %v780_v59 = vpop.xlane.xlu2 %779 }
 0x7b6   :  { %v784_v57 = vmul.f32 %v780_v59, %v2086_v10 }
 0x7b8   :  { %v786_v61 = vadd.f32 1e-05, %v784_v57 }
 0x7ba   :  { %1881 = vrsqrt.f32 %v786_v61  ;;  %vm794_vm6 = vweird.f32 %v786_v61 }
 0x7c0   :  { %v1882_v62 = vpop.eup %1881 }
 0x7c1   :  { %v789_v63 = vmul.f32 %v1882_v62, %v786_v61  ;;  %vm795_vm5 = vweird.f32 %v1882_v62 }
 0x7c2   :  { %vm796_vm7 = vmor %vm794_vm6, %vm795_vm5 }
 0x7c3   :  { %v790_v0 = vmul.f32 %v1882_v62, %v789_v63 }
 0x7c4   :  { %v783_v1 = vpop.xlane.xlu2 %782 }
 0x7c5   :  { %v791_v2 = vmul.f32 0.5, %v790_v0  ;;  %v785_v3 = vmul.f32 %v783_v1, %v2086_v10 }
 0x7c7   :  { %v792_v4 = vsub.f32 1.5, %v791_v2  ;;  %v787_v5 = vadd.f32 1e-05, %v785_v3 }
 0x7c9   :  { %v793_v6 = vmul.f32 %v1882_v62, %v792_v4  ;;  %1883 = vrsqrt.f32 %v787_v5  ;;  %vm804_vm11 = vweird.f32 %v787_v5 }
 0x7cb   :  { %v797_v8 = vsel %vm796_vm7, %v1882_v62, %v793_v6 }
 0x7cc   :  { %v808_v9 = vmul.f32 %v797_v8, %v774_v37 }
 0x7ce   :  { %v811_v12 = vmul.f32 %v1836_v7, %v808_v9 }
 0x7cf   :  { %v1884_v13 = vpop.eup %1883 }
 0x7d0   :  { %v799_v14 = vmul.f32 %v1884_v13, %v787_v5  ;;  %v2191_v55 = vadd.f32 %v1837_v11, %v811_v12  ;;  %vm805_vm10 = vweird.f32 %v1884_v13 }
 0x7d1   :  { %vm806_vm12 = vmor %vm804_vm11, %vm805_vm10 }
 0x7d2   :  { %v800_v15 = vmul.f32 %v1884_v13, %v799_v14  ;;  %1778 = vmatmul.msk.f32.vlgmr.msrb.gmra.mxu1 %vm70_vm0, %v2191_v55  ;;  %1780 = vmatmul.msk.f32.vlgmr.msrb.gmra.mxu2 %vm70_vm0, %v2191_v55 }
 0x7d3   :  { %1782 = vmatmul.msk.f32.vlgmr.msrb.gmra.mxu3 %vm70_vm0, %v2191_v55 }
 0x7d4   :  { %v801_v16 = vmul.f32 0.5, %v800_v15 }
 0x7d6   :  { %v802_v18 = vsub.f32 1.5, %v801_v16 }
 0x7d8   :  { %v803_v19 = vmul.f32 %v1884_v13, %v802_v18 }
 0x7da   :  { %v807_v60 = vsel %vm806_vm12, %v1884_v13, %v803_v19 }
 0x7db   :  { %v809_v20 = vmul.f32 %v807_v60, %v2184_v42 }
 0x7dd   :  { %v812_v21 = vmul.f32 %v1836_v7, %v809_v20 }
 0x7df   :  { %v2200_v23 = vadd.f32 %v1837_v11, %v812_v21 }
 0x7e1   :  { %1779 = vmatmul.msk.f32.gmra.mxu1 %vm70_vm0, %v2200_v23  ;;  %1781 = vmatmul.msk.f32.gmra.mxu2 %vm70_vm0, %v2200_v23 }
 0x7e2   :  { %1783 = vmatmul.msk.f32.gmra.mxu3 %vm70_vm0, %v2200_v23 }
 0x84f   :  { %v845_v25 = vpop.f32.mrf.mxu1 }
 0x850   :  { %v846_v26 = vadd.f32 %v1838_v24, %v845_v25 }
 0x852   :  { %911 = vrot.lane.b32.xlu0 %v846_v26, %s2043_s2 }
 0x855   :  { %v874_v30 = vpop.f32.mrf.mxu2 }
 0x856   :  { %v875_v31 = vadd.f32 %v1839_v28, %v874_v30  ;;  %v903_v33 = vpop.f32.mrf.mxu3 }
 0x857   :  { %v904_v34 = vadd.f32 %v1840_v29, %v903_v33 }
 0x858   :  { %917 = vrot.lane.b32.xlu2 %v875_v31, %s2043_s2  ;;  %1784 = vmatpush.xpose.msk.msra.mxu0 %vm241_vm8, %v875_v31 }
 0x85b   :  { %1785 = vmatmul.msk.f32.vlgmr.msra.gmra.mxu0 %vm241_vm8, %v846_v26 }
 0x85c   :  { %1147 = vmatpush.msrb.mxu0 %v904_v34 }
 0x85e   :  { %v848_v35 = vpop.f32.mrf.mxu1 }
 0x85f   :  { %v849_v36 = vadd.f32 %v1838_v24, %v848_v35 }
 0x861   :  { %913 = vrot.lane.b32.xlu2 %v849_v36, %s2043_s2 }
 0x864   :  { %v877_v37 = vpop.f32.mrf.mxu2 }
 0x865   :  { %v878_v38 = vadd.f32 %v1839_v28, %v877_v37  ;;  %v906_v39 = vpop.f32.mrf.mxu3 }
 0x866   :  { %v2213_v40 = vadd.f32 %v1840_v29, %v906_v39 }
 0x867   :  { %919 = vrot.lane.b32.xlu1 %v878_v38, %s2043_s2  ;;  %1786 = vmatpush.xpose.msk.msra.mxu1 %vm241_vm8, %v878_v38 }
 0x86a   :  { %1787 = vmatmul.msk.f32.vlgmr.msra.gmra.mxu1 %vm241_vm8, %v849_v36 }
 0x86b   :  { %1170 = vmatpush.msrb.mxu1 %v2213_v40 }
 0x8b2   :  { %v918_v41 = vpop.permute.xlu2 %917 }
 0x8b3   :  { %1788 = vmatpush.xpose.msk.msra.mxu2 %vm241_vm8, %v918_v41 }
 0x8bb   :  { %v914_v47 = vpop.permute.xlu2 %913 }
 0x8c4   :  { %v912_v42 = vpop.permute.xlu0 %911 }
 0x8c5   :  { %1789 = vmatmul.msk.f32.vlgmr.msra.gmra.mxu2 %vm241_vm8, %v912_v42  ;;  %v1223_v42 = vld [vmem:[#allocation7 + $0x1a8] sm:$0xff] }
 0x8c6   :  { %1244 = vmatpush.msra.mxu0 %v1223_v42  ;;  %v1343_v42 = vld [vmem:[#allocation7 + $0x1c0] sm:$0xff] }
 0x8d8   :  { %v950_v43 = vpop.f32.mrf.mxu0 }
 0x8d9   :  { %v1025_v44 = vmul.f32 0.25, %v950_v43  ;;  %v920_v45 = vpop.permute.xlu1 %919 }
 0x8da   :  { %1790 = vmatpush.xpose.msk.msra.mxu3 %vm241_vm8, %v920_v45 }
 0x8db   :  { %v1029_v46 = vadd.f32 %v2127_v17, %v1025_v44 }
 0x8dd   :  { %1791 = vmatmul.msk.f32.vlgmr.msra.gmra.mxu3 %vm241_vm8, %v914_v47  ;;  %v1033_v48 = vsel %vm358_vm9, %v1029_v46, -inf }
 0x8de   :  { %1034 = vmax.xlane.f32.xlu2 %v1033_v48  ;;  %v1222_v48 = vld [vmem:[#allocation7 + $0x1a0] sm:$0xff] }
 0x8df   :  { %1245 = vmatpush.msra.mxu0 %v1222_v48 }
 0x8e7   :  { %v974_v51 = vpop.f32.mrf.mxu1 }
 0x8e8   :  { %v1026_v53 = vmul.f32 0.25, %v974_v51  ;;  %v1257_v51 = vld [vmem:[#allocation7 + $0x1b8] sm:$0xff] }
 0x8e9   :  { %1278 = vmatpush.msra.mxu1 %v1257_v51  ;;  %v1842_v51 = vld [vmem:[#allocation7 + $0x240] ss:$0 sm:$0xff] }
 0x8ea   :  { %v1030_v56 = vadd.f32 %v2131_v22, %v1026_v53 }
 0x8ec   :  { %v1036_v58 = vsel %vm358_vm9, %v1030_v56, -inf }
 0x948   :  { %v998_v49 = vpop.f32.mrf.mxu2 }
 0x949   :  { %v1027_v50 = vmul.f32 0.25, %v998_v49 }
 0x94b   :  { %v1031_v52 = vadd.f32 %v2136_v27, %v1027_v50 }
 0x94d   :  { %v1039_v54 = vsel %vm358_vm9, %v1031_v52, -inf }
 0x94e   :  { %1040 = vmax.xlane.f32.xlu0 %v1039_v54 }
 0x951   :  { %v1035_v17 = vpop.xlane.xlu2 %1034 }
 0x952   :  { %v1045_v59 = vsub.f32 %v1029_v46, %v1035_v17 }
 0x954   :  { %v1049_v57 = vmul.f32 1.442695, %v1045_v59 }
 0x956   :  { %1037 = vmax.xlane.f32.xlu0 %v1036_v58  ;;  %1885 = vpow2.f32 %v1049_v57 }
 0x95c   :  { %v1886_v27 = vpop.eup %1885 }
 0x95d   :  { %v1057_v1 = vsel %vm358_vm9, %v1886_v27, 0.0 }
 0x960   :  { %v1022_v61 = vpop.f32.mrf.mxu3 }
 0x961   :  { %v1028_v62 = vmul.f32 0.25, %v1022_v61 }
 0x963   :  { %v1032_v63 = vadd.f32 %v2140_v32, %v1028_v62 }
 0x965   :  { %v1042_v0 = vsel %vm358_vm9, %v1032_v63, -inf }
 0x966   :  { %1043 = vmax.xlane.f32.xlu1 %v1042_v0 }
 0x96e   :  { %1058 = vadd.xlane.f32.xlu1 %v1057_v1 }
 0x987   :  { %923 = vrot.lane.b32.xlu1 %v904_v34, %s2043_s2 }
 0x9c1   :  { %v1041_v22 = vpop.xlane.xlu0 %1040 }
 0x9c2   :  { %v1047_v2 = vsub.f32 %v1031_v52, %v1041_v22 }
 0x9c4   :  { %v1053_v3 = vmul.f32 1.442695, %v1047_v2 }
 0x9c6   :  { %1887 = vpow2.f32 %v1053_v3 }
 0x9c9   :  { %v1038_v4 = vpop.xlane.xlu0 %1037 }
 0x9ca   :  { %v1046_v5 = vsub.f32 %v1030_v56, %v1038_v4 }
 0x9cc   :  { %v1888_v6 = vpop.eup %1887  ;;  %v1051_v7 = vmul.f32 1.442695, %v1046_v5 }
 0x9cd   :  { %v1063_v32 = vsel %vm358_vm9, %v1888_v6, 0.0 }
 0x9ce   :  { %1889 = vpow2.f32 %v1051_v7  ;;  %1064 = vadd.xlane.f32.xlu2 %v1063_v32 }
 0x9d4   :  { %v2234_v8 = vpop.eup %1889 }
 0x9d5   :  { %v1060_v9 = vsel %vm358_vm9, %v2234_v8, 0.0 }
 0x9d6   :  { %1061 = vadd.xlane.f32.xlu2 %v1060_v9 }
 0x9d9   :  { %v1044_v11 = vpop.xlane.xlu1 %1043 }
 0x9da   :  { %v1048_v12 = vsub.f32 %v1032_v63, %v1044_v11 }
 0x9dc   :  { %v1055_v13 = vmul.f32 1.442695, %v1048_v12 }
 0x9de   :  { %1891 = vpow2.f32 %v1055_v13  ;;  %v1841_v13 = vld [vmem:[#allocation7 + $0x238] ss:$0 sm:$0xff] }
 0x9e1   :  { %v1059_v14 = vpop.xlane.xlu1 %1058 }
 0x9e2   :  { %1893 = vrcp.f32 %v1059_v14  ;;  %v1080_v20 = vand.u32 2147483648, %v1059_v14  ;;  %v1078_v24 = vand.u32 2147483647, %v1059_v14  ;;  %vm1074_vm14 = vweird.f32 %v1059_v14 }
 0x9e4   :  { %v2238_v15 = vpop.eup %1891  ;;  %v1081_v26 = vor.u32 1.1754944e-38, %v1080_v20  ;;  %vm1079_vm1 = vcmp.eq.f32.partialorder %v1078_v24, 8.507059e+37 }
 0x9e5   :  { %v1066_v16 = vsel %vm358_vm9, %v2238_v15, 0.0 }
 0x9e6   :  { %1067 = vadd.xlane.f32.xlu0 %v1066_v16 }
 0x9e8   :  { %v1894_v18 = vpop.eup %1893 }
 0x9e9   :  { %v1070_v19 = vmul.f32 %v1894_v18, %v1059_v14  ;;  %vm1075_vm13 = vweird.f32 %v1894_v18 }
 0x9ea   :  { %vm1076_vm15 = vmor %vm1074_vm14, %vm1075_vm13 }
 0x9eb   :  { %v1071_v60 = vsub.f32 1.0, %v1070_v19 }
 0x9ed   :  { %v1072_v21 = vmul.f32 %v1894_v18, %v1071_v60 }
 0x9ef   :  { %v1073_v25 = vadd.f32 %v1894_v18, %v1072_v21 }
 0x9f1   :  { %v1077_v28 = vsel %vm1076_vm15, %v1894_v18, %v1073_v25 }
 0x9f2   :  { %v1082_v29 = vsel %vm1079_vm1, %v1081_v26, %v1077_v28 }
 0x9f3   :  { %v1083_v30 = vmul.f32 %v1886_v27, %v1082_v29 }
 0x9f5   :  { %1792 = vmatmul.msk.f32.vlgmr.msrb.gmra.mxu0 %vm358_vm9, %v1083_v30 }
 0x9f9   :  { %v924_v31 = vpop.permute.xlu1 %923 }
 0x9fa   :  { %925 = vrot.lane.b32.xlu0 %v2213_v40, %s2043_s2  ;;  %1193 = vmatpush.msrb.mxu2 %v924_v31 }
 0xa41   :  { %v1065_v33 = vpop.xlane.xlu2 %1064 }
 0xa42   :  { %1895 = vrcp.f32 %v1065_v33  ;;  %v1110_v38 = vand.u32 2147483648, %v1065_v33  ;;  %v1108_v41 = vand.u32 2147483647, %v1065_v33  ;;  %vm1104_vm3 = vweird.f32 %v1065_v33 }
 0xa44   :  { %v1111_v45 = vor.u32 1.1754944e-38, %v1110_v38  ;;  %vm1109_vm6 = vcmp.eq.f32.partialorder %v1108_v41, 8.507059e+37  ;;  %v1344_v41 = vld [vmem:[#allocation7 + $0x1c8] sm:$0xff] }
 0xa48   :  { %v1896_v34 = vpop.eup %1895 }
 0xa49   :  { %v1100_v35 = vmul.f32 %v1896_v34, %v1065_v33  ;;  %v1062_v36 = vpop.xlane.xlu2 %1061  ;;  %vm1105_vm2 = vweird.f32 %v1896_v34 }
 0xa4a   :  { %1897 = vrcp.f32 %v1062_v36  ;;  %vm1106_vm5 = vmor %vm1104_vm3, %vm1105_vm2  ;;  %v1095_v52 = vand.u32 2147483648, %v1062_v36  ;;  %v1093_v54 = vand.u32 2147483647, %v1062_v36  ;;  %vm1089_vm10 = vweird.f32 %v1062_v36 }
 0xa4b   :  { %v1101_v37 = vsub.f32 1.0, %v1100_v35 }
 0xa4c   :  { %v1096_v58 = vor.u32 1.1754944e-38, %v1095_v52  ;;  %vm1094_vm12 = vcmp.eq.f32.partialorder %v1093_v54, 8.507059e+37  ;;  %v1843_v54 = vld [vmem:[#allocation7 + $0x248] ss:$0 sm:$0xff] }
 0xa4d   :  { %v1102_v39 = vmul.f32 %v1896_v34, %v1101_v37 }
 0xa4f   :  { %v1103_v43 = vadd.f32 %v1896_v34, %v1102_v39  ;;  %v1345_v39 = vld [vmem:[#allocation7 + $0x1d0] sm:$0xff] }
 0xa50   :  { %v1898_v44 = vpop.eup %1897 }
 0xa51   :  { %v1107_v40 = vsel %vm1106_vm5, %v1896_v34, %v1103_v43  ;;  %v1085_v46 = vmul.f32 %v1898_v44, %v1062_v36  ;;  %vm1090_vm7 = vweird.f32 %v1898_v44 }
 0xa52   :  { %v1112_v47 = vsel %vm1109_vm6, %v1111_v45, %v1107_v40  ;;  %vm1091_vm11 = vmor %vm1089_vm10, %vm1090_vm7 }
 0xa53   :  { %v1086_v49 = vsub.f32 1.0, %v1085_v46  ;;  %v1113_v50 = vmul.f32 %v1888_v6, %v1112_v47 }
 0xa55   :  { %v1087_v53 = vmul.f32 %v1898_v44, %v1086_v49  ;;  %1794 = vmatmul.msk.f32.vlgmr.msrb.gmra.mxu2 %vm358_vm9, %v1113_v50 }
 0xa57   :  { %v1088_v56 = vadd.f32 %v1898_v44, %v1087_v53 }
 0xa59   :  { %v1092_v17 = vsel %vm1091_vm11, %v1898_v44, %v1088_v56  ;;  %v1068_v59 = vpop.xlane.xlu0 %1067 }
 0xa5a   :  { %v1097_v57 = vsel %vm1094_vm12, %v1096_v58, %v1092_v17  ;;  %1899 = vrcp.f32 %v1068_v59  ;;  %v1125_v27 = vand.u32 2147483648, %v1068_v59  ;;  %v1123_v22 = vand.u32 2147483647, %v1068_v59 }
 0xa5b   :  { %v1098_v61 = vmul.f32 %v2234_v8, %v1097_v57  ;;  %vm1119_vm14 = vweird.f32 %v1068_v59  ;;  %v1256_v8 = vld [vmem:[#allocation7 + $0x1b0] sm:$0xff] }
 0xa5c   :  { %v1126_v3 = vor.u32 1.1754944e-38, %v1125_v27  ;;  %vm1124_vm1 = vcmp.eq.f32.partialorder %v1123_v22, 8.507059e+37  ;;  %1279 = vmatpush.msra.mxu1 %v1256_v8  ;;  %v1399_v8 = vld [vmem:[#allocation7 + $0x1f8] sm:$0xff] }
 0xa5d   :  { %1793 = vmatmul.msk.f32.vlgmr.msrb.gmra.mxu1 %vm358_vm9, %v1098_v61 }
 0xa60   :  { %v1900_v62 = vpop.eup %1899 }
 0xa61   :  { %v1115_v63 = vmul.f32 %v1900_v62, %v1068_v59  ;;  %vm1120_vm13 = vweird.f32 %v1900_v62 }
 0xa62   :  { %vm1121_vm15 = vmor %vm1119_vm14, %vm1120_vm13 }
 0xa63   :  { %v1116_v0 = vsub.f32 1.0, %v1115_v63 }
 0xa65   :  { %v1117_v1 = vmul.f32 %v1900_v62, %v1116_v0 }
 0xa67   :  { %v1118_v2 = vadd.f32 %v1900_v62, %v1117_v1 }
 0xa69   :  { %v1122_v4 = vsel %vm1121_vm15, %v1900_v62, %v1118_v2  ;;  %vm1639_vm15 = vcmask 72704  }
 0xa6a   :  { %v1127_v5 = vsel %vm1124_vm1, %v1126_v3, %v1122_v4  ;;  %vm1561_vm1 = vcmask 31744  }
 0xa6b   :  { %v1128_v6 = vmul.f32 %v2238_v15, %v1127_v5  ;;  %v1403_v5 = vld [vmem:[#allocation7 + $0x218] sm:$0xff] }
 0xa6c   :  { %v926_v7 = vpop.permute.xlu0 %925 }
 0xa6d   :  { %1216 = vmatpush.msrb.mxu3 %v926_v7  ;;  %v1401_v7 = vld [vmem:[#allocation7 + $0x208] sm:$0xff] }
 0xa6e   :  { %1795 = vmatmul.msk.f32.vlgmr.msrb.gmra.mxu3 %vm358_vm9, %v1128_v6  ;;  %v1402_v6 = vld [vmem:[#allocation7 + $0x210] sm:$0xff] }
 0xa6f   :  { %1420 = vmatpush.msra.mxu3 %v1403_v5 }
 0xa71   :  { %1421 = vmatpush.msra.mxu3 %v1402_v6 }
 0xa72   :  { %v1149_v32 = vpop.f32.mrf.mxu0 }
 0xa73   :  { %1796 = vmatmul.msk.f32.vlgmr.msra.gmra.mxu0 %vm241_vm8, %v1149_v32  ;;  %1422 = vmatpush.msra.mxu3 %v1401_v7  ;;  %v1400_v32 = vld [vmem:[#allocation7 + $0x200] sm:$0xff] }
 0xa75   :  { %1423 = vmatpush.msra.mxu3 %v1400_v32 }
 0xa77   :  { %1424 = vmatpush.msra.mxu3 %v1399_v8  ;;  %v1846_v8 = vld [vmem:[#allocation7 + $0x260] ss:$0 sm:$0xff] }
 0xad8   :  { %v1195_v9 = vpop.f32.mrf.mxu2 }
 0xad9   :  { %1798 = vmatmul.msk.f32.vlgmr.msra.gmra.mxu1 %vm241_vm8, %v1195_v9  ;;  %v1398_v9 = vld [vmem:[#allocation7 + $0x1f0] sm:$0xff] }
 0xada   :  { %v1172_v11 = vpop.f32.mrf.mxu1  ;;  %1425 = vmatpush.msra.mxu3 %v1398_v9 }
 0xadb   :  { %1797 = vmatmul.msk.f32.gmra.mxu0 %vm241_vm8, %v1172_v11  ;;  %v1397_v11 = vld [vmem:[#allocation7 + $0x1e8] sm:$0xff] }
 0xadc   :  { %1426 = vmatpush.msra.mxu3 %v1397_v11 }
 0xaf0   :  { %v1247_v14 = vpop.f32.mrf.mxu0 }
 0xaf1   :  { %v1218_v12 = vpop.f32.mrf.mxu3  ;;  %v1254_v15 = vadd.f32 %v1841_v13, %v1247_v14 }
 0xaf2   :  { %1799 = vmatmul.msk.f32.gmra.mxu1 %vm241_vm8, %v1218_v12  ;;  %v1396_v12 = vld [vmem:[#allocation7 + $0x1e0] sm:$0xff] }
 0xaf3   :  { %1427 = vmatpush.msra.mxu3 %v1396_v12  ;;  %v1847_v12 = vld [vmem:[#allocation7 + $0x268] ss:$0 sm:$0xff] }
 0xb56   :  { %v1281_v16 = vpop.f32.mrf.mxu1 }
 0xb57   :  { %v1287_v18 = vadd.f32 %v1281_v16, %v1254_v15 }
 0xb58   :  { %v1250_v20 = vpop.f32.mrf.mxu0 }
 0xb59   :  { %v1289_v19 = vadd.f32 %v1287_v18, %v2191_v55  ;;  %v1255_v21 = vadd.f32 %v1841_v13, %v1250_v20  ;;  %v1844_v13 = vld [vmem:[#allocation7 + $0x250] ss:$0 sm:$0xff] }
 0xb5b   :  { %v1293_v60 = vsel %vm70_vm0, %v1289_v19, 0.0 }
 0xb5c   :  { %1294 = vadd.xlane.f32.xlu2 %v1293_v60 }
 0xb6f   :  { %v1284_v24 = vpop.f32.mrf.mxu1 }
 0xb70   :  { %v1288_v25 = vadd.f32 %v1284_v24, %v1255_v21 }
 0xb72   :  { %v1290_v26 = vadd.f32 %v1288_v25, %v2200_v23  ;;  %v1346_v23 = vld [vmem:[#allocation7 + $0x1d8] sm:$0xff] }
 0xb73   :  { %1367 = vmatpush.msra.mxu2 %v1346_v23  ;;  %v1845_v23 = vld [vmem:[#allocation7 + $0x258] ss:$0 sm:$0xff] }
 0xb74   :  { %v1296_v28 = vsel %vm70_vm0, %v1290_v26, 0.0 }
 0xb75   :  { %1297 = vadd.xlane.f32.xlu2 %v1296_v28  ;;  %1368 = vmatpush.msra.mxu2 %v1345_v39 }
 0xb77   :  { %1369 = vmatpush.msra.mxu2 %v1344_v41 }
 0xb79   :  { %1370 = vmatpush.msra.mxu2 %v1343_v42 }
 0xbcf   :  { %v1295_v29 = vpop.xlane.xlu2 %1294 }
 0xbd0   :  { %v1299_v30 = vmul.f32 %v1295_v29, %v2086_v10 }
 0xbd2   :  { %v1301_v31 = vsub.f32 %v1289_v19, %v1299_v30 }
 0xbd4   :  { %v1303_v33 = vmul.f32 %v1301_v31, %v1301_v31 }
 0xbd6   :  { %v1305_v34 = vsel %vm70_vm0, %v1303_v33, 0.0 }
 0xbd7   :  { %1306 = vadd.xlane.f32.xlu2 %v1305_v34 }
 0xbe8   :  { %v1298_v55 = vpop.xlane.xlu2 %1297 }
 0xbe9   :  { %v1300_v35 = vmul.f32 %v1298_v55, %v2086_v10 }
 0xbeb   :  { %v1302_v36 = vsub.f32 %v1290_v26, %v1300_v35 }
 0xbed   :  { %v1304_v37 = vmul.f32 %v1302_v36, %v1302_v36 }
 0xbef   :  { %v1308_v38 = vsel %vm70_vm0, %v1304_v37, 0.0 }
 0xbf0   :  { %1309 = vadd.xlane.f32.xlu0 %v1308_v38 }
 0xc4a   :  { %v1307_v43 = vpop.xlane.xlu2 %1306 }
 0xc4b   :  { %v1311_v44 = vmul.f32 %v1307_v43, %v2086_v10 }
 0xc4d   :  { %v1313_v45 = vadd.f32 1e-05, %v1311_v44 }
 0xc4f   :  { %1901 = vrsqrt.f32 %v1313_v45  ;;  %vm1321_vm2 = vweird.f32 %v1313_v45 }
 0xc55   :  { %v1902_v40 = vpop.eup %1901 }
 0xc56   :  { %v1316_v46 = vmul.f32 %v1902_v40, %v1313_v45  ;;  %vm1322_vm9 = vweird.f32 %v1902_v40 }
 0xc57   :  { %vm1323_vm3 = vmor %vm1321_vm2, %vm1322_vm9 }
 0xc58   :  { %v1317_v47 = vmul.f32 %v1902_v40, %v1316_v46 }
 0xc5a   :  { %v1318_v48 = vmul.f32 0.5, %v1317_v47 }
 0xc5c   :  { %v1319_v49 = vsub.f32 1.5, %v1318_v48 }
 0xc5e   :  { %v1320_v50 = vmul.f32 %v1902_v40, %v1319_v49 }
 0xc60   :  { %v1324_v52 = vsel %vm1323_vm3, %v1902_v40, %v1320_v50 }
 0xc61   :  { %v1335_v53 = vmul.f32 %v1324_v52, %v1301_v31 }
 0xc63   :  { %v1338_v56 = vmul.f32 %v1842_v51, %v1335_v53  ;;  %v1310_v58 = vpop.xlane.xlu0 %1309 }
 0xc64   :  { %v1312_v17 = vmul.f32 %v1310_v58, %v2086_v10 }
 0xc65   :  { %v2264_v59 = vadd.f32 %v1843_v54, %v1338_v56 }
 0xc66   :  { %v1314_v57 = vadd.f32 1e-05, %v1312_v17  ;;  %v1492_v17 = vld [vmem:[#allocation7 + $0x288] sm:$0xff] }
 0xc67   :  { %1800 = vmatmul.msk.f32.vlgmr.msra.gmra.mxu2 %vm70_vm0, %v2264_v59  ;;  %1513 = vmatpush.msrb.mxu0 %v1492_v17 }
 0xc68   :  { %1903 = vrsqrt.f32 %v1314_v57  ;;  %vm1331_vm6 = vweird.f32 %v1314_v57 }
 0xc6e   :  { %v1904_v61 = vpop.eup %1903 }
 0xc6f   :  { %v1326_v62 = vmul.f32 %v1904_v61, %v1314_v57  ;;  %vm1332_vm5 = vweird.f32 %v1904_v61  ;;  %v1491_v57 = vld [vmem:[#allocation7 + $0x280] sm:$0xff] }
 0xc70   :  { %vm1333_vm7 = vmor %vm1331_vm6, %vm1332_vm5  ;;  %1514 = vmatpush.msrb.mxu0 %v1491_v57 }
 0xc71   :  { %v1327_v63 = vmul.f32 %v1904_v61, %v1326_v62  ;;  %v1490_v62 = vld [vmem:[#allocation7 + $0x278] sm:$0xff] }
 0xc72   :  { %1515 = vmatpush.msrb.mxu0 %v1490_v62 }
 0xc73   :  { %v1328_v0 = vmul.f32 0.5, %v1327_v63  ;;  %v1611_v63 = vld [vmem:[#allocation7 + $0x2b8] sm:$0xff] }
 0xc75   :  { %v1329_v27 = vsub.f32 1.5, %v1328_v0  ;;  %v1489_v0 = vld [vmem:[#allocation7 + $0x270] sm:$0xff] }
 0xc76   :  { %1516 = vmatpush.msrb.mxu0 %v1489_v0 }
 0xc77   :  { %v1330_v1 = vmul.f32 %v1904_v61, %v1329_v27  ;;  %v1610_v27 = vld [vmem:[#allocation7 + $0x2b0] sm:$0xff] }
 0xc79   :  { %v1334_v22 = vsel %vm1333_vm7, %v1904_v61, %v1330_v1  ;;  %v1612_v61 = vld [vmem:[#allocation7 + $0x2c0] sm:$0xff] }
 0xc7a   :  { %v1336_v2 = vmul.f32 %v1334_v22, %v1302_v36 }
 0xc7c   :  { %v1339_v3 = vmul.f32 %v1842_v51, %v1336_v2 }
 0xc7e   :  { %v1342_v4 = vadd.f32 %v1843_v54, %v1339_v3 }
 0xc80   :  { %1801 = vmatmul.msk.f32.gmra.mxu2 %vm70_vm0, %v1342_v4 }
 0xcea   :  { %v1372_v14 = vpop.f32.mrf.mxu2 }
 0xceb   :  { %v1373_v15 = vadd.f32 %v1844_v13, %v1372_v14 }
 0xced   :  { %v1378_v16 = vmul.f32 %v1373_v15, %v1373_v15 }
 0xcef   :  { %v1380_v18 = vmul.f32 %v1378_v16, %v1373_v15 }
 0xcf1   :  { %v1382_v19 = vmul.f32 0.044715, %v1380_v18 }
 0xcf3   :  { %v1384_v60 = vadd.f32 %v1382_v19, %v1373_v15 }
 0xcf5   :  { %v1386_v20 = vmul.f32 0.7978846, %v1384_v60 }
 0xcf7   :  { %1905 = vtanh.f32 %v1386_v20 }
 0xcfd   :  { %v1906_v21 = vpop.eup %1905 }
 0xcfe   :  { %v1390_v24 = vadd.f32 1.0, %v1906_v21 }
 0xd00   :  { %v1392_v25 = vmul.f32 0.5, %v1390_v24 }
 0xd02   :  { %v1394_v26 = vmul.f32 %v1392_v25, %v1373_v15 }
 0xd03   :  { %v1375_v28 = vpop.f32.mrf.mxu2 }
 0xd04   :  { %v1376_v29 = vadd.f32 %v1844_v13, %v1375_v28  ;;  %1802 = vmatmul.msk.f32.vlgmr.msra.gmra.mxu3 %vm732_vm4, %v1394_v26 }
 0xd06   :  { %v1379_v30 = vmul.f32 %v1376_v29, %v1376_v29 }
 0xd08   :  { %v1381_v31 = vmul.f32 %v1379_v30, %v1376_v29  ;;  %v1529_v30 = vld [vmem:[#allocation7 + $0x2a8] sm:$0xff] }
 0xd09   :  { %1550 = vmatpush.msrb.mxu1 %v1529_v30 }
 0xd0a   :  { %v1383_v33 = vmul.f32 0.044715, %v1381_v31  ;;  %v1528_v31 = vld [vmem:[#allocation7 + $0x2a0] sm:$0xff] }
 0xd0b   :  { %1551 = vmatpush.msrb.mxu1 %v1528_v31 }
 0xd0c   :  { %v1385_v34 = vadd.f32 %v1383_v33, %v1376_v29  ;;  %v1527_v33 = vld [vmem:[#allocation7 + $0x298] sm:$0xff] }
 0xd0d   :  { %1552 = vmatpush.msrb.mxu1 %v1527_v33 }
 0xd0e   :  { %v1387_v55 = vmul.f32 0.7978846, %v1385_v34  ;;  %v1526_v34 = vld [vmem:[#allocation7 + $0x290] sm:$0xff] }
 0xd0f   :  { %1553 = vmatpush.msrb.mxu1 %v1526_v34 }
 0xd10   :  { %1907 = vtanh.f32 %v1387_v55  ;;  %v1848_v55 = vld [vmem:[#allocation7 + $0x2d0] ss:$0 sm:$0xff] }
 0xd16   :  { %v1908_v35 = vpop.eup %1907 }
 0xd17   :  { %v1391_v36 = vadd.f32 1.0, %v1908_v35 }
 0xd19   :  { %v1393_v37 = vmul.f32 0.5, %v1391_v36 }
 0xd1b   :  { %v1395_v38 = vmul.f32 %v1393_v37, %v1376_v29  ;;  %v1849_v37 = vld [vmem:[#allocation7 + $0x2e0] ss:$0 sm:$0xff] }
 0xd1d   :  { %1803 = vmatmul.msk.f32.gmra.mxu3 %vm732_vm4, %v1395_v38 }
 0xd87   :  { %v1429_v39 = vpop.f32.mrf.mxu3 }
 0xd88   :  { %v1430_v41 = vadd.f32 %v1845_v23, %v1429_v39 }
 0xd8a   :  { %v1435_v42 = vadd.f32 %v1430_v41, %v2264_v59  ;;  %v1613_v59 = vld [vmem:[#allocation7 + $0x2c8] sm:$0xff] }
 0xd8b   :  { %1628 = vmatpush.msrb.mxu2 %v1613_v59 }
 0xd8c   :  { %v1439_v43 = vsel %vm70_vm0, %v1435_v42, 0.0 }
 0xd8d   :  { %1440 = vadd.xlane.f32.xlu1 %v1439_v43  ;;  %1629 = vmatpush.msrb.mxu2 %v1612_v61 }
 0xd8f   :  { %1630 = vmatpush.msrb.mxu2 %v1611_v63 }
 0xd91   :  { %1631 = vmatpush.msrb.mxu2 %v1610_v27 }
 0xda0   :  { %v1432_v44 = vpop.f32.mrf.mxu3 }
 0xda1   :  { %v1433_v45 = vadd.f32 %v1845_v23, %v1432_v44 }
 0xda3   :  { %v1436_v40 = vadd.f32 %v1433_v45, %v1342_v4 }
 0xda5   :  { %v1442_v46 = vsel %vm70_vm0, %v1436_v40, 0.0 }
 0xda6   :  { %1443 = vadd.xlane.f32.xlu2 %v1442_v46 }
 0xe00   :  { %v1441_v47 = vpop.xlane.xlu1 %1440 }
 0xe01   :  { %v1445_v48 = vmul.f32 %v1441_v47, %v2086_v10 }
 0xe03   :  { %v1447_v49 = vsub.f32 %v1435_v42, %v1445_v48 }
 0xe05   :  { %v1449_v50 = vmul.f32 %v1447_v49, %v1447_v49 }
 0xe07   :  { %v1451_v51 = vsel %vm70_vm0, %v1449_v50, 0.0  ;;  %v1850_v50 = vld [vmem:[#allocation7 + $0x2d8] ss:$0 sm:$0xff] }
 0xe08   :  { %1452 = vadd.xlane.f32.xlu2 %v1451_v51 }
 0xe19   :  { %v1444_v52 = vpop.xlane.xlu2 %1443 }
 0xe1a   :  { %v1446_v53 = vmul.f32 %v1444_v52, %v2086_v10 }
 0xe1c   :  { %v1448_v54 = vsub.f32 %v1436_v40, %v1446_v53 }
 0xe1e   :  { %v1450_v56 = vmul.f32 %v1448_v54, %v1448_v54 }
 0xe20   :  { %v1454_v58 = vsel %vm70_vm0, %v1450_v56, 0.0 }
 0xe21   :  { %1455 = vadd.xlane.f32.xlu2 %v1454_v58 }
 0xe7b   :  { %v1453_v1 = vpop.xlane.xlu2 %1452 }
 0xe7c   :  { %v1457_v22 = vmul.f32 %v1453_v1, %v2086_v10 }
 0xe7e   :  { %v1459_v2 = vadd.f32 1e-05, %v1457_v22 }
 0xe80   :  { %1909 = vrsqrt.f32 %v1459_v2  ;;  %vm1467_vm10 = vweird.f32 %v1459_v2 }
 0xe86   :  { %v1910_v3 = vpop.eup %1909 }
 0xe87   :  { %v1462_v4 = vmul.f32 %v1910_v3, %v1459_v2  ;;  %vm1468_vm4 = vweird.f32 %v1910_v3 }
 0xe88   :  { %vm1469_vm11 = vmor %vm1467_vm10, %vm1468_vm4 }
 0xe89   :  { %v1463_v5 = vmul.f32 %v1910_v3, %v1462_v4 }
 0xe8b   :  { %v1464_v6 = vmul.f32 0.5, %v1463_v5 }
 0xe8d   :  { %v1465_v7 = vsub.f32 1.5, %v1464_v6 }
 0xe8f   :  { %v1466_v32 = vmul.f32 %v1910_v3, %v1465_v7 }
 0xe91   :  { %v1470_v9 = vsel %vm1469_vm11, %v1910_v3, %v1466_v32 }
 0xe92   :  { %v1481_v11 = vmul.f32 %v1470_v9, %v1447_v49 }
 0xe94   :  { %v1484_v13 = vmul.f32 %v1846_v8, %v1481_v11  ;;  %v1456_v14 = vpop.xlane.xlu2 %1455 }
 0xe95   :  { %v1458_v15 = vmul.f32 %v1456_v14, %v2086_v10 }
 0xe96   :  { %v1487_v16 = vadd.f32 %v1847_v12, %v1484_v13 }
 0xe97   :  { %v1460_v18 = vadd.f32 1e-05, %v1458_v15 }
 0xe98   :  { %1804 = vmatmul.msk.f32.vlgmr.msrb.gmra.mxu0 %vm70_vm0, %v1487_v16  ;;  %1808 = vmatmul.msk.f32.vlgmr.msrb.gmra.mxu2 %vm70_vm0, %v1487_v16 }
 0xe99   :  { %1911 = vrsqrt.f32 %v1460_v18  ;;  %vm1477_vm13 = vweird.f32 %v1460_v18 }
 0xe9f   :  { %v1912_v19 = vpop.eup %1911 }
 0xea0   :  { %v1472_v60 = vmul.f32 %v1912_v19, %v1460_v18  ;;  %vm1478_vm12 = vweird.f32 %v1912_v19 }
 0xea1   :  { %vm1479_vm14 = vmor %vm1477_vm13, %vm1478_vm12 }
 0xea2   :  { %v1473_v20 = vmul.f32 %v1912_v19, %v1472_v60 }
 0xea4   :  { %v1474_v21 = vmul.f32 0.5, %v1473_v20 }
 0xea6   :  { %v1475_v24 = vsub.f32 1.5, %v1474_v21 }
 0xea8   :  { %v1476_v25 = vmul.f32 %v1912_v19, %v1475_v24 }
 0xeaa   :  { %v1480_v26 = vsel %vm1479_vm14, %v1912_v19, %v1476_v25 }
 0xeab   :  { %v1482_v28 = vmul.f32 %v1480_v26, %v1448_v54 }
 0xead   :  { %v1485_v29 = vmul.f32 %v1846_v8, %v1482_v28 }
 0xeaf   :  { %v1488_v10 = vadd.f32 %v1847_v12, %v1485_v29 }
 0xeb1   :  { %1805 = vmatmul.msk.f32.gmra.mxu0 %vm70_vm0, %v1488_v10  ;;  %1809 = vmatmul.msk.f32.gmra.mxu2 %vm70_vm0, %v1488_v10 }
 0xf15   :  { %v1518_v35 = vpop.f32.mrf.mxu0 }
 0xf16   :  { %v1519_v36 = vadd.f32 %v1848_v55, %v1518_v35 }
 0xf18   :  { %1913 = vtanh.f32 %v1519_v36 }
 0xf1b   :  { %v1633_v38 = vpop.f32.mrf.mxu2 }
 0xf1c   :  { %v2284_v23 = vadd.f32 %v1849_v37, %v1633_v38 }
 0xf1e   :  { %v1914_v39 = vpop.eup %1913  ;;  %v1640_v41 = vsel %vm1639_vm15, %v2284_v23, -inf }
 0xf1f   :  { %1641 = vmax.xlane.f32.xlu2 %v1640_v41  ;;  %1806 = vmatmul.msk.f32.vlgmr.msrb.gmra.mxu1 %vm70_vm0, %v1914_v39 }
 0xf2e   :  { %v1521_v42 = vpop.f32.mrf.mxu0 }
 0xf2f   :  { %v1522_v43 = vadd.f32 %v1848_v55, %v1521_v42 }
 0xf31   :  { %1915 = vtanh.f32 %v1522_v43 }
 0xf34   :  { %v1636_v44 = vpop.f32.mrf.mxu2 }
 0xf35   :  { %v2289_v45 = vadd.f32 %v1849_v37, %v1636_v44 }
 0xf37   :  { %v1916_v40 = vpop.eup %1915  ;;  %v1643_v46 = vsel %vm1639_vm15, %v2289_v45, -inf }
 0xf38   :  { %1644 = vmax.xlane.f32.xlu2 %v1643_v46  ;;  %1807 = vmatmul.msk.f32.gmra.mxu1 %vm70_vm0, %v1916_v40 }
 0xf92   :  { %v1642_v47 = vpop.xlane.xlu2 %1641 }
 0xf93   :  { %v1646_v48 = vsub.f32 %v2284_v23, %v1642_v47 }
 0xf95   :  { %v1648_v49 = vmul.f32 1.442695, %v1646_v48 }
 0xf97   :  { %1917 = vpow2.f32 %v1648_v49 }
 0xf9c   :  { %v1555_v51 = vpop.f32.mrf.mxu1 }
 0xf9d   :  { %v1918_v52 = vpop.eup %1917  ;;  %v2295_v53 = vadd.f32 %v1850_v50, %v1555_v51 }
 0xf9e   :  { %v1652_v54 = vsel %vm1639_vm15, %v1918_v52, 0.0 }
 0xf9f   :  { %1653 = vadd.xlane.f32.xlu1 %v1652_v54  ;;  %v1562_v56 = vsel %vm1561_vm1, %v2295_v53, -inf }
 0xfa0   :  { %1563 = vmax.xlane.f32.xlu0 %v1562_v56 }
 0xfab   :  { %v1645_v58 = vpop.xlane.xlu2 %1644 }
 0xfac   :  { %v1647_v17 = vsub.f32 %v2289_v45, %v1645_v58 }
 0xfae   :  { %v1650_v59 = vmul.f32 1.442695, %v1647_v17 }
 0xfb0   :  { %1919 = vpow2.f32 %v1650_v59 }
 0xfb5   :  { %v1558_v57 = vpop.f32.mrf.mxu1 }
 0xfb6   :  { %v1920_v61 = vpop.eup %1919  ;;  %v1559_v62 = vadd.f32 %v1850_v50, %v1558_v57 }
 0xfb7   :  { %v1655_v63 = vsel %vm1639_vm15, %v1920_v61, 0.0 }
 0xfb8   :  { %1656 = vadd.xlane.f32.xlu0 %v1655_v63  ;;  %v1565_v0 = vsel %vm1561_vm1, %v1559_v62, -inf }
 0xfb9   :  { %1566 = vmax.xlane.f32.xlu2 %v1565_v0 }
0x1012   :  { %v1654_v27 = vpop.xlane.xlu1 %1653 }
0x1013   :  { %1921 = vrcp.f32 %v1654_v27  ;;  %v1564_v1 = vpop.xlane.xlu0 %1563  ;;  %v1669_v6 = vand.u32 2147483648, %v1654_v27  ;;  %v1667_v8 = vand.u32 2147483647, %v1654_v27  ;;  %vm1663_vm2 = vweird.f32 %v1654_v27 }
0x1014   :  { %v1568_v22 = vsub.f32 %v2295_v53, %v1564_v1 }
0x1015   :  { %v1670_v12 = vor.u32 1.1754944e-38, %v1669_v6  ;;  %vm1668_vm5 = vcmp.eq.f32.partialorder %v1667_v8, 8.507059e+37 }
0x1016   :  { %v1570_v2 = vmul.f32 1.442695, %v1568_v22 }
0x1018   :  { %1923 = vpow2.f32 %v1570_v2 }
0x1019   :  { %v1922_v3 = vpop.eup %1921 }
0x101a   :  { %v1659_v4 = vmul.f32 %v1922_v3, %v1654_v27  ;;  %vm1664_vm9 = vweird.f32 %v1922_v3 }
0x101b   :  { %vm1665_vm3 = vmor %vm1663_vm2, %vm1664_vm9 }
0x101c   :  { %v1660_v5 = vsub.f32 1.0, %v1659_v4 }
0x101e   :  { %v1924_v7 = vpop.eup %1923  ;;  %v1661_v32 = vmul.f32 %v1922_v3, %v1660_v5 }
0x101f   :  { %v1574_v9 = vsel %vm1561_vm1, %v1924_v7, 0.0 }
0x1020   :  { %1575 = vadd.xlane.f32.xlu2 %v1574_v9  ;;  %v1662_v11 = vadd.f32 %v1922_v3, %v1661_v32 }
0x1022   :  { %v1666_v13 = vsel %vm1665_vm3, %v1922_v3, %v1662_v11 }
0x1023   :  { %v1671_v14 = vsel %vm1668_vm5, %v1670_v12, %v1666_v13  ;;  %vm1716_vm5 = vcmask 203776  }
0x1024   :  { %v1672_v15 = vmul.f32 %v1918_v52, %v1671_v14 }
0x1026   :  { %1690 = vrot.lane.b32.xlu0 %v1672_v15, %s2036_s20 }
0x102b   :  { %v1657_v16 = vpop.xlane.xlu0 %1656 }
0x102c   :  { %1925 = vrcp.f32 %v1657_v16  ;;  %v1567_v18 = vpop.xlane.xlu2 %1566  ;;  %v1684_v25 = vand.u32 2147483648, %v1657_v16  ;;  %v1682_v29 = vand.u32 2147483647, %v1657_v16  ;;  %vm1678_vm7 = vweird.f32 %v1657_v16 }
0x102d   :  { %v1569_v19 = vsub.f32 %v1559_v62, %v1567_v18 }
0x102e   :  { %1700 = vrot.lane.b32.xlu0 %v1559_v62, %s2044_s29  ;;  %v1685_v31 = vor.u32 1.1754944e-38, %v1684_v25  ;;  %vm1683_vm10 = vcmp.eq.f32.partialorder %v1682_v29, 8.507059e+37  ;;  %v1712_v62 = vsel %vm1639_vm15, %v2284_v23, 0.0  ;;  %v1713_v23 = vsel %vm1639_vm15, %v2289_v45, 0.0 }
0x102f   :  { %v1572_v60 = vmul.f32 1.442695, %v1569_v19 }
0x1031   :  { %1927 = vpow2.f32 %v1572_v60 }
0x1032   :  { %v1926_v20 = vpop.eup %1925 }
0x1033   :  { %v1674_v21 = vmul.f32 %v1926_v20, %v1657_v16  ;;  %vm1679_vm6 = vweird.f32 %v1926_v20 }
0x1034   :  { %vm1680_vm4 = vmor %vm1678_vm7, %vm1679_vm6  ;;  %vm1724_vm6 = vcmask 392192   ;;  %vm1721_vm7 = vcmask 293888  }
0x1035   :  { %v1675_v24 = vsub.f32 1.0, %v1674_v21 }
0x1037   :  { %v1928_v26 = vpop.eup %1927  ;;  %v1676_v28 = vmul.f32 %v1926_v20, %v1675_v24 }
0x1038   :  { %v1577_v10 = vsel %vm1561_vm1, %v1928_v26, 0.0 }
0x1039   :  { %1578 = vadd.xlane.f32.xlu1 %v1577_v10  ;;  %v1677_v30 = vadd.f32 %v1926_v20, %v1676_v28 }
0x103b   :  { %v1681_v33 = vsel %vm1680_vm4, %v1926_v20, %v1677_v30  ;;  %vm1727_vm4 = vcmask 424960  }
0x103c   :  { %v1686_v34 = vsel %vm1683_vm10, %v1685_v31, %v1681_v33 }
0x103d   :  { %v1687_v55 = vmul.f32 %v1920_v61, %v1686_v34 }
0x103f   :  { %1692 = vrot.lane.b32.xlu2 %v1687_v55, %s2036_s20 }
0x1052   :  { %1698 = vrot.lane.b32.xlu1 %v2295_v53, %s2044_s29 }
0x1093   :  { %v1576_v35 = vpop.xlane.xlu2 %1575 }
0x1094   :  { %1929 = vrcp.f32 %v1576_v35  ;;  %v1591_v39 = vand.u32 2147483648, %v1576_v35  ;;  %v1589_v42 = vand.u32 2147483647, %v1576_v35  ;;  %vm1585_vm12 = vweird.f32 %v1576_v35 }
0x1096   :  { %v1592_v44 = vor.u32 1.1754944e-38, %v1591_v39  ;;  %vm1590_vm14 = vcmp.eq.f32.partialorder %v1589_v42, 8.507059e+37 }
0x1098   :  { %v1691_v61 = vpop.permute.xlu0 %1690 }
0x1099   :  { %v1714_v0 = vsel %vm241_vm8, %v1712_v62, %v1691_v61 }
0x109a   :  { %v1930_v36 = vpop.eup %1929  ;;  %v1717_v1 = vsel %vm1716_vm5, %v1714_v0, 0.0 }
0x109b   :  { %v1581_v37 = vmul.f32 %v1930_v36, %v1576_v35  ;;  %vm1586_vm11 = vweird.f32 %v1930_v36  ;;  %v1693_v63 = vpop.permute.xlu2 %1692 }
0x109c   :  { %vm1587_vm13 = vmor %vm1585_vm12, %vm1586_vm11 }
0x109d   :  { %v1582_v38 = vsub.f32 1.0, %v1581_v37 }
0x109f   :  { %v1583_v41 = vmul.f32 %v1930_v36, %v1582_v38 }
0x10a0   :  { %v1701_v6 = vpop.permute.xlu0 %1700 }
0x10a1   :  { %v1584_v43 = vadd.f32 %v1930_v36, %v1583_v41 }
0x10a3   :  { %v1588_v40 = vsel %vm1587_vm13, %v1930_v36, %v1584_v43 }
0x10a4   :  { %v1593_v46 = vsel %vm1590_vm14, %v1592_v44, %v1588_v40 }
0x10a5   :  { %v1594_v47 = vmul.f32 %v1924_v7, %v1593_v46  ;;  %v1715_v7 = vsel %vm241_vm8, %v1713_v23, %v1693_v63 }
0x10a6   :  { %v1718_v32 = vsel %vm1716_vm5, %v1715_v7, 0.0 }
0x10a7   :  { %1706 = vrot.lane.b32.xlu2 %v1594_v47, %s2045_s30  ;;  %v1720_v8 = vsel %vm70_vm0, %v1718_v32, %v1701_v6 }
0x10a8   :  { %v1723_v9 = vsel %vm1721_vm7, %v1720_v8, 0.0 }
0x10ac   :  { %v1579_v48 = vpop.xlane.xlu1 %1578 }
0x10ad   :  { %1931 = vrcp.f32 %v1579_v48  ;;  %v1606_v52 = vand.u32 2147483648, %v1579_v48  ;;  %v1604_v54 = vand.u32 2147483647, %v1579_v48  ;;  %vm1600_vm9 = vweird.f32 %v1579_v48 }
0x10af   :  { %v1607_v58 = vor.u32 1.1754944e-38, %v1606_v52  ;;  %vm1605_vm3 = vcmp.eq.f32.partialorder %v1604_v54, 8.507059e+37 }
0x10b3   :  { %v1932_v49 = vpop.eup %1931 }
0x10b4   :  { %v1596_v50 = vmul.f32 %v1932_v49, %v1579_v48  ;;  %vm1601_vm1 = vweird.f32 %v1932_v49 }
0x10b5   :  { %vm1602_vm2 = vmor %vm1600_vm9, %vm1601_vm1 }
0x10b6   :  { %v1597_v51 = vsub.f32 1.0, %v1596_v50 }
0x10b8   :  { %v1598_v53 = vmul.f32 %v1932_v49, %v1597_v51 }
0x10ba   :  { %v1599_v56 = vadd.f32 %v1932_v49, %v1598_v53 }
0x10bc   :  { %v1603_v17 = vsel %vm1602_vm2, %v1932_v49, %v1599_v56 }
0x10bd   :  { %v1608_v59 = vsel %vm1605_vm3, %v1607_v58, %v1603_v17 }
0x10be   :  { %v1609_v57 = vmul.f32 %v1928_v26, %v1608_v59 }
0x10c0   :  { %1708 = vrot.lane.b32.xlu0 %v1609_v57, %s2045_s30 }
0x10c4   :  { %v1699_v27 = vpop.permute.xlu1 %1698 }
0x10c5   :  { %v1719_v22 = vsel %vm70_vm0, %v1717_v1, %v1699_v27 }
0x10c6   :  { %v1722_v2 = vsel %vm1721_vm7, %v1719_v22, 0.0 }
0x1101   :  { %v1707_v3 = vpop.permute.xlu2 %1706 }
0x1102   :  { %v1725_v4 = vsel %vm1724_vm6, %v1722_v2, %v1707_v3 }
0x1103   :  { %v1728_v5 = vsel %vm1727_vm4, %v1725_v4, 0.0 }
0x1104   :  { %1730 = vst [vmem:[#allocation8] sm:$0xff] %v1728_v5 }
0x1132   :  { %v1709_v11 = vpop.permute.xlu0 %1708 }
0x1133   :  { %v1726_v12 = vsel %vm1724_vm6, %v1723_v9, %v1709_v11 }
0x1134   :  { %v1729_v45 = vsel %vm1727_vm4, %v1726_v12, 0.0 }
0x1135   :  { %1731 = vst [vmem:[#allocation8 + $0x8] sm:$0xff] %v1729_v45 }
0x1136   :  { %1744 = dma.vmem_to_hbm [thread:$0]  %s1737_s5, 256, %s1739_s8, [#allocation4], %s2039_s24, %s2039_s24, %s2040_s1  }
0x1137   :  { %2033 = dma.done.wait [#allocation4], 256  }
0x1138   :  { %2034 = vsyncadd [#allocation4], 4294967040 }
0x1139   :  { %1749 = vsyncpa [#allocation3], 1 }
0x113a   :  { %1750 = vsyncpa [#allocation6], 1 }
0x113b   :  { %1751 = vsyncpa [#allocation4], 1 }

</bundles_post_ra>
